<compile_context>
chip_gen: v5e
topology: v5e:2x2
jax: 0.10.0
libtpu: 0.0.40
codegen_flags: <defaults>
</compile_context>

<pallas_src>
import jax
import jax.numpy as jnp
from jax.experimental import pallas as pl
from jax.experimental.pallas import tpu as pltpu

H1, H2, H3 = 256, 256, 128


def _round_up(n, m):
    return ((n + m - 1) // m) * m


def _default_tile_and_vmem():
    """Per-generation batch-tile / scoped-VMEM defaults (perf-review guidance)."""
    try:
        kind = jax.devices()[0].device_kind.lower()
    except Exception:
        kind = ""
    if "v6" in kind:                      # 128 MiB VMEM, fast MXU: go big, raise scoped limit
        return 4096, 40 * 1024 * 1024
    if "v7" in kind or "7x" in kind:      # 64 MiB VMEM per TC: cap tile, modest limit
        return 2048, 28 * 1024 * 1024
    return 2048, None                     # v5e & unknown: fits the default scoped VMEM


def _mlp_kernel(x_ref,
                w1_ref, b1_ref,
                w2_ref, b2_ref,
                w3_ref, b3_ref,
                w4_ref, b4_ref,
                o_ref):
    """Fused MLP forward for one feature-major (in_f, tile_m) batch tile.

    Activations are (features, tile_m): the batch lives in lanes, so stores are
    lane-dense and the final per-row scalar is naturally a (1, tile_m) row.
    """
    x_t = x_ref[...]                                                     # (in_f, tile_m) bf16

    h1 = jnp.dot(w1_ref[...], x_t,
                 preferred_element_type=jnp.float32) + b1_ref[...]      # (256, tile_m) f32
    h1 = jnp.maximum(h1, 0.0)

    h2 = jnp.dot(w2_ref[...], h1.astype(jnp.bfloat16),
                 preferred_element_type=jnp.float32) + b2_ref[...]      # (256, tile_m) f32
    h2 = jnp.maximum(h2, 0.0)

    h3 = jnp.dot(w3_ref[...], h2.astype(jnp.bfloat16),
                 preferred_element_type=jnp.float32) + b3_ref[...]      # (128, tile_m) f32
    h3 = jnp.maximum(h3, 0.0)

    # Final 128 -> 1 linear: VPU multiply (w4 column broadcast along lanes) + XLU
    # sublane reduction -> lane-dense (1, tile_m) row.  Stays in f32.
    out_row = jnp.sum(h3 * w4_ref[...], axis=0, keepdims=True) + b4_ref[0, 0]
    o_ref[...] = out_row.astype(o_ref.dtype)


def regression_nn_forward(x, params, tile_m=None, vmem_limit_bytes=None):
    """x: (B, input_size) f32; params: PyTorch-layout weights (out, in) and biases (out,)."""
    B, in_f = x.shape

    if tile_m is None:
        tile_m, default_vmem = _default_tile_and_vmem()
        if vmem_limit_bytes is None:
            vmem_limit_bytes = default_vmem
    tile_m = min(tile_m, _round_up(B, 256))        # don't compute rows that don't exist

    n_tiles = pl.cdiv(B, tile_m)
    Bp = n_tiles * tile_m

    # Feature-major x so the batch lives in lanes; transpose + bf16 cast (+ pad)
    # fuse into a single small XLA pass over x.
    x_t = x.T.astype(jnp.bfloat16)                 # (in_f, B)
    if Bp != B:
        x_t = jnp.pad(x_t, ((0, 0), (0, Bp - B)))  # padded columns are sliced off below

    # Weights in bf16 for the MXU (PyTorch (out, in) layout is exactly what the
    # transposed formulation wants); biases as f32 columns; final layer in f32.
    w1 = params["w1"].astype(jnp.bfloat16)                       # (256, in_f)
    w2 = params["w2"].astype(jnp.bfloat16)                       # (256, 256)
    w3 = params["w3"].astype(jnp.bfloat16)                       # (128, 256)
    b1 = params["b1"].reshape(H1, 1).astype(jnp.float32)
    b2 = params["b2"].reshape(H2, 1).astype(jnp.float32)
    b3 = params["b3"].reshape(H3, 1).astype(jnp.float32)
    w4 = params["w4"].reshape(H3, 1).astype(jnp.float32)         # (128, 1) column for VPU/XLU
    b4 = params["b4"].reshape(1, 1).astype(jnp.float32)          # scalar, lives in SMEM

    # Weights/biases: full block, constant index_map -> fetched once, resident in VMEM.
    resident = lambda a: pl.BlockSpec(a.shape, lambda i: (0, 0))

    flops = 2 * Bp * (in_f * H1 + H1 * H2 + H2 * H3 + H3)
    bytes_accessed = (x_t.size * 2 + Bp * 4
                      + (w1.size + w2.size + w3.size) * 2
                      + (b1.size + b2.size + b3.size + w4.size + b4.size) * 4)

    out = pl.pallas_call(
        _mlp_kernel,
        out_shape=jax.ShapeDtypeStruct((1, Bp), jnp.float32),    # lane-dense output row
        grid=(n_tiles,),
        in_specs=[
            pl.BlockSpec((in_f, tile_m), lambda i: (0, i)),      # x: pipelined per batch tile
            resident(w1), resident(b1),
            resident(w2), resident(b2),
            resident(w3), resident(b3),
            resident(w4),
            pl.BlockSpec(memory_space=pltpu.MemorySpace.SMEM),   # b4 scalar in SMEM
        ],
        out_specs=pl.BlockSpec((1, tile_m), lambda i: (0, i)),
        compiler_params=pltpu.CompilerParams(
            dimension_semantics=("parallel",),
            vmem_limit_bytes=vmem_limit_bytes),
        cost_estimate=pl.CostEstimate(
            flops=flops, transcendentals=0, bytes_accessed=bytes_accessed),
    )(x_t, w1, b1, w2, b2, w3, b3, w4, b4)

    return out.reshape(Bp, 1)[:B]


def init_params(key, input_size):
    """Deterministic init mirroring nn.Linear (PyTorch layout: weight (out, in), bias (out,))."""
    dims = [(input_size, H1), (H1, H2), (H2, H3), (H3, 1)]
    params = {}
    for i, (fan_in, fan_out) in enumerate(dims, start=1):
        kw, kb, key = jax.random.split(key, 3)
        bound = 1.0 / jnp.sqrt(fan_in)   # PyTorch default: U(-1/sqrt(fan_in), 1/sqrt(fan_in))
        params[f"w{i}"] = jax.random.uniform(
            kw, (fan_out, fan_in), jnp.float32, minval=-bound, maxval=bound)
        params[f"b{i}"] = jax.random.uniform(
            kb, (fan_out,), jnp.float32, minval=-bound, maxval=bound)
    return params


def reference_forward(x, p):
    """Pure-JAX reference mirroring the kernel's bf16-matmul / f32-accumulate math."""
    h = jnp.maximum(jnp.dot(x.astype(jnp.bfloat16), p["w1"].astype(jnp.bfloat16).T,
                            preferred_element_type=jnp.float32) + p["b1"], 0.0)
    h = jnp.maximum(jnp.dot(h.astype(jnp.bfloat16), p["w2"].astype(jnp.bfloat16).T,
                            preferred_element_type=jnp.float32) + p["b2"], 0.0)
    h = jnp.maximum(jnp.dot(h.astype(jnp.bfloat16), p["w3"].astype(jnp.bfloat16).T,
                            preferred_element_type=jnp.float32) + p["b3"], 0.0)
    return jnp.dot(h, p["w4"].T) + p["b4"]   # final 128->1 layer stays f32


if __name__ == "__main__":
    key = jax.random.PRNGKey(0)
    kx, kp = jax.random.split(key)

    batch, input_size = 8, 32
    x = jax.random.normal(kx, (batch, input_size), dtype=jnp.float32)
    params = init_params(kp, input_size)

    out = jax.block_until_ready(regression_nn_forward(x, params))

    ref = reference_forward(x, params)
    assert out.shape == (batch, 1)
    assert jnp.allclose(out, ref, atol=5e-3, rtol=5e-3)

    print("KERNEL_OK")
</pallas_src>

<mosaic_0001>
module attributes {stable_mosaic.version = 11 : i64} {
  func.func @_mlp_kernel(%arg0: i32, %arg1: memref<32x256xbf16, #tpu.memory_space<vmem>>, %arg2: memref<256x32xbf16, #tpu.memory_space<vmem>>, %arg3: memref<256x1xf32, #tpu.memory_space<vmem>>, %arg4: memref<256x256xbf16, #tpu.memory_space<vmem>>, %arg5: memref<256x1xf32, #tpu.memory_space<vmem>>, %arg6: memref<128x256xbf16, #tpu.memory_space<vmem>>, %arg7: memref<128x1xf32, #tpu.memory_space<vmem>>, %arg8: memref<128x1xf32, #tpu.memory_space<vmem>>, %arg9: memref<1x1xf32, #tpu.memory_space<smem>>, %arg10: memref<1x256xf32, #tpu.memory_space<vmem>>) attributes {dimension_semantics = [#tpu.dimension_semantics<parallel>], iteration_bounds = array<i64: 1>, scalar_prefetch = 0 : i64, scratch_operands = 0 : i64, tpu.core_type = #tpu.core_type<tc>, window_params = [{transform_indices = @transform_0, window_bounds = array<i64: 32, 256>}, {pipeline_mode = #tpu.pipeline_mode<synchronous>, transform_indices = @transform_1, window_bounds = array<i64: 256, 32>}, {pipeline_mode = #tpu.pipeline_mode<synchronous>, transform_indices = @transform_2, window_bounds = array<i64: 256, 1>}, {pipeline_mode = #tpu.pipeline_mode<synchronous>, transform_indices = @transform_3, window_bounds = array<i64: 256, 256>}, {pipeline_mode = #tpu.pipeline_mode<synchronous>, transform_indices = @transform_4, window_bounds = array<i64: 256, 1>}, {pipeline_mode = #tpu.pipeline_mode<synchronous>, transform_indices = @transform_5, window_bounds = array<i64: 128, 256>}, {pipeline_mode = #tpu.pipeline_mode<synchronous>, transform_indices = @transform_6, window_bounds = array<i64: 128, 1>}, {pipeline_mode = #tpu.pipeline_mode<synchronous>, transform_indices = @transform_7, window_bounds = array<i64: 128, 1>}, {transform_indices = @transform_8, window_bounds = array<i64: 1, 1>}, {transform_indices = @transform_9, window_bounds = array<i64: 1, 256>}]} {
    %c0 = arith.constant 0 : index
    %c0_0 = arith.constant 0 : index
    %0 = vector.load %arg1[%c0, %c0_0] : memref<32x256xbf16, #tpu.memory_space<vmem>>, vector<32x256xbf16>
    %c0_1 = arith.constant 0 : index
    %c0_2 = arith.constant 0 : index
    %1 = vector.load %arg2[%c0_1, %c0_2] : memref<256x32xbf16, #tpu.memory_space<vmem>>, vector<256x32xbf16>
    %cst = arith.constant dense<0.000000e+00> : vector<256x256xf32>
    %2 = tpu.matmul %1, %0, %cst {dimension_numbers = #tpu.dot_dimension_numbers<[1], [0], [0], [1], [0, 0, 1, 1], [], []>} : vector<256x32xbf16>, vector<32x256xbf16>, vector<256x256xf32> -> vector<256x256xf32>
    %c0_3 = arith.constant 0 : index
    %c0_4 = arith.constant 0 : index
    %3 = vector.load %arg3[%c0_3, %c0_4] : memref<256x1xf32, #tpu.memory_space<vmem>>, vector<256x1xf32>
    %4 = vector.broadcast %3 : vector<256x1xf32> to vector<256x256xf32>
    %5 = arith.addf %2, %4 : vector<256x256xf32>
    %cst_5 = arith.constant 0.000000e+00 : f32
    %6 = vector.broadcast %cst_5 : f32 to vector<256x256xf32>
    %7 = arith.maximumf %5, %6 : vector<256x256xf32>
    %c0_6 = arith.constant 0 : index
    %c0_7 = arith.constant 0 : index
    %8 = vector.load %arg4[%c0_6, %c0_7] : memref<256x256xbf16, #tpu.memory_space<vmem>>, vector<256x256xbf16>
    %9 = arith.truncf %7 : vector<256x256xf32> to vector<256x256xbf16>
    %cst_8 = arith.constant dense<0.000000e+00> : vector<256x256xf32>
    %10 = tpu.matmul %8, %9, %cst_8 {dimension_numbers = #tpu.dot_dimension_numbers<[1], [0], [0], [1], [0, 0, 1, 1], [], []>} : vector<256x256xbf16>, vector<256x256xbf16>, vector<256x256xf32> -> vector<256x256xf32>
    %c0_9 = arith.constant 0 : index
    %c0_10 = arith.constant 0 : index
    %11 = vector.load %arg5[%c0_9, %c0_10] : memref<256x1xf32, #tpu.memory_space<vmem>>, vector<256x1xf32>
    %12 = vector.broadcast %11 : vector<256x1xf32> to vector<256x256xf32>
    %13 = arith.addf %10, %12 : vector<256x256xf32>
    %cst_11 = arith.constant 0.000000e+00 : f32
    %14 = vector.broadcast %cst_11 : f32 to vector<256x256xf32>
    %15 = arith.maximumf %13, %14 : vector<256x256xf32>
    %c0_12 = arith.constant 0 : index
    %c0_13 = arith.constant 0 : index
    %16 = vector.load %arg6[%c0_12, %c0_13] : memref<128x256xbf16, #tpu.memory_space<vmem>>, vector<128x256xbf16>
    %17 = arith.truncf %15 : vector<256x256xf32> to vector<256x256xbf16>
    %cst_14 = arith.constant dense<0.000000e+00> : vector<128x256xf32>
    %18 = tpu.matmul %16, %17, %cst_14 {dimension_numbers = #tpu.dot_dimension_numbers<[1], [0], [0], [1], [0, 0, 1, 1], [], []>} : vector<128x256xbf16>, vector<256x256xbf16>, vector<128x256xf32> -> vector<128x256xf32>
    %c0_15 = arith.constant 0 : index
    %c0_16 = arith.constant 0 : index
    %19 = vector.load %arg7[%c0_15, %c0_16] : memref<128x1xf32, #tpu.memory_space<vmem>>, vector<128x1xf32>
    %20 = vector.broadcast %19 : vector<128x1xf32> to vector<128x256xf32>
    %21 = arith.addf %18, %20 : vector<128x256xf32>
    %cst_17 = arith.constant 0.000000e+00 : f32
    %22 = vector.broadcast %cst_17 : f32 to vector<128x256xf32>
    %23 = arith.maximumf %21, %22 : vector<128x256xf32>
    %c0_18 = arith.constant 0 : index
    %c0_19 = arith.constant 0 : index
    %24 = vector.load %arg8[%c0_18, %c0_19] : memref<128x1xf32, #tpu.memory_space<vmem>>, vector<128x1xf32>
    %25 = vector.broadcast %24 : vector<128x1xf32> to vector<128x256xf32>
    %26 = arith.mulf %23, %25 : vector<128x256xf32>
    %cst_20 = arith.constant dense<0.000000e+00> : vector<256xf32>
    %27 = vector.multi_reduction <add>, %26, %cst_20 [0] : vector<128x256xf32> to vector<256xf32>
    %28 = vector.shape_cast %27 : vector<256xf32> to vector<1x256xf32>
    %c0_21 = arith.constant 0 : index
    %c0_22 = arith.constant 0 : index
    %29 = memref.load %arg9[%c0_21, %c0_22] : memref<1x1xf32, #tpu.memory_space<smem>>
    %30 = vector.broadcast %29 : f32 to vector<1x256xf32>
    %31 = arith.addf %28, %30 : vector<1x256xf32>
    %c0_23 = arith.constant 0 : index
    %c0_24 = arith.constant 0 : index
    %32 = vector.load %arg10[%c0_23, %c0_24] : memref<1x256xf32, #tpu.memory_space<vmem>>, vector<1x256xf32>
    tpu.vector_store %arg10[%c0_23, %c0_24], %31 {strides = array<i32>} : memref<1x256xf32, #tpu.memory_space<vmem>>, vector<1x256xf32>,
    return
  }
  func.func @transform_0(%arg0: i32) -> (i32, i32) {
    %c0_i32 = arith.constant 0 : i32
    %c0_i32_0 = arith.constant 0 : i32
    return %c0_i32, %arg0 : i32, i32
  }
  func.func @transform_1(%arg0: i32) -> (i32, i32) {
    %c0_i32 = arith.constant 0 : i32
    %c0_i32_0 = arith.constant 0 : i32
    %c0_i32_1 = arith.constant 0 : i32
    return %c0_i32, %c0_i32_0 : i32, i32
  }
  func.func @transform_2(%arg0: i32) -> (i32, i32) {
    %c0_i32 = arith.constant 0 : i32
    %c0_i32_0 = arith.constant 0 : i32
    %c0_i32_1 = arith.constant 0 : i32
    return %c0_i32, %c0_i32_0 : i32, i32
  }
  func.func @transform_3(%arg0: i32) -> (i32, i32) {
    %c0_i32 = arith.constant 0 : i32
    %c0_i32_0 = arith.constant 0 : i32
    %c0_i32_1 = arith.constant 0 : i32
    return %c0_i32, %c0_i32_0 : i32, i32
  }
  func.func @transform_4(%arg0: i32) -> (i32, i32) {
    %c0_i32 = arith.constant 0 : i32
    %c0_i32_0 = arith.constant 0 : i32
    %c0_i32_1 = arith.constant 0 : i32
    return %c0_i32, %c0_i32_0 : i32, i32
  }
  func.func @transform_5(%arg0: i32) -> (i32, i32) {
    %c0_i32 = arith.constant 0 : i32
    %c0_i32_0 = arith.constant 0 : i32
    %c0_i32_1 = arith.constant 0 : i32
    return %c0_i32, %c0_i32_0 : i32, i32
  }
  func.func @transform_6(%arg0: i32) -> (i32, i32) {
    %c0_i32 = arith.constant 0 : i32
    %c0_i32_0 = arith.constant 0 : i32
    %c0_i32_1 = arith.constant 0 : i32
    return %c0_i32, %c0_i32_0 : i32, i32
  }
  func.func @transform_7(%arg0: i32) -> (i32, i32) {
    %c0_i32 = arith.constant 0 : i32
    %c0_i32_0 = arith.constant 0 : i32
    %c0_i32_1 = arith.constant 0 : i32
    return %c0_i32, %c0_i32_0 : i32, i32
  }
  func.func @transform_8(%arg0: i32) -> (i32, i32) {
    %c0_i32 = arith.constant 0 : i32
    %c0_i32_0 = arith.constant 0 : i32
    %c0_i32_1 = arith.constant 0 : i32
    return %c0_i32, %c0_i32_0 : i32, i32
  }
  func.func @transform_9(%arg0: i32) -> (i32, i32) {
    %c0_i32 = arith.constant 0 : i32
    %c0_i32_0 = arith.constant 0 : i32
    return %c0_i32, %arg0 : i32, i32
  }
}

</mosaic_0001>

<bundles_post_ra>
// kernel: tpu_custom_call.1
= control target key start
LH: loop header
LB: loop body
LE: loop exit
PB: predicated region body
PF: predicated region fallthrough
CT: control target
= control target key end

     0   :  { %v2546_v3 = vmov 0   ;;  %s4046_s0 = inlined_call_operand.vmem [shape: bf16[32,256], index: 0, kind: input, shape index: {}]   ;;  %s4047_s1 = inlined_call_operand.vmem [shape: bf16[256,32], index: 1, kind: input, shape index: {}]   ;;  %s4048_s2 = inlined_call_operand.vmem [shape: f32[256,1], index: 2, kind: input, shape index: {}]   ;;  %s4049_s3 = inlined_call_operand.vmem [shape: bf16[256,256], index: 3, kind: input, shape index: {}]   ;;  %s4050_s4 = inlined_call_operand.vmem [shape: f32[256,1], index: 4, kind: input, shape index: {}]   ;;  %s4051_s5 = inlined_call_operand.vmem [shape: bf16[128,256], index: 5, kind: input, shape index: {}]   ;;  %s4052_s6 = inlined_call_operand.vmem [shape: f32[128,1], index: 6, kind: input, shape index: {}]   ;;  %s4053_s7 = inlined_call_operand.vmem [shape: f32[128,1], index: 7, kind: input, shape index: {}]   ;;  %s4054_s8 = inlined_call_operand.<no memory space> [shape: f32[1,1], index: 8, kind: input, shape index: {}]   ;;  %s4055_s9 = inlined_call_operand.hbm [shape: f32[1,256], index: 9, kind: output, shape index: {}]  }
   0x1   :  { %v101_v0 = vld [vmem:[%s4048_s2 + $0xf0] sm:$0xff]  ;;  %v83_v2 = vld [vmem:[%s4048_s2 + $0x60] sm:$0xff]  ;;  %2519 = vset.pattern.permute.xlu2 %v2546_v3  ;;  %2518 = vset.pattern.permute.xlu1 %v2546_v3  ;;  %v2450_v5 = vld [vmem:[%s4046_s0 + $0x14] sm:$0xf0] }
   0x2   :  { %v85_v1 = vld [vmem:[%s4048_s2 + $0x70] sm:$0xff]  ;;  %2517 = vset.pattern.permute.xlu0 %v2546_v3  ;;  %255 = vperm.xlu1 %2518, %v101_v0   ;;  %v2219_v8 = vld [vmem:[%s4046_s0 + $0x18] sm:$0xf0]  ;;  %v2209_v9 = vld [vmem:[%s4046_s0] sm:$0xf] }
   0x3   :  { %v2217_v4 = vld [vmem:[%s4046_s0 + $0x10] sm:$0xf]  ;;  %v2449_v6 = vld [vmem:[%s4046_s0 + $0x14] sm:$0xf]  ;;  %v2448_v10 = vld [vmem:[%s4046_s0 + $0x4] sm:$0xf0]  ;;  %175 = vperm.xlu0 %2517, %v85_v1   ;;  %165 = vperm.xlu2 %2519, %v83_v2  }
   0x4   :  { %v2218_v7 = vor.u32 %v2450_v5, %v2217_v4  ;;  %v2222_v11 = vor.u32 %v2449_v6, %v2219_v8  ;;  %v2447_v12 = vld [vmem:[%s4046_s0 + $0x4] sm:$0xf]  ;;  %v2211_v13 = vld [vmem:[%s4046_s0 + $0x8] sm:$0xf0]  ;;  %v2210_v14 = vor.u32 %v2448_v10, %v2209_v9  ;;  %v102_v16 = vld [vmem:[%s4048_s2 + $0xf8] sm:$0xff] }
   0x5   :  { %v2214_v15 = vor.u32 %v2447_v12, %v2211_v13  ;;  %v86_v17 = vld [vmem:[%s4048_s2 + $0x78] sm:$0xff]  ;;  %v84_v18 = vld [vmem:[%s4048_s2 + $0x68] sm:$0xff]  ;;  %v2451_v19 = vld [vmem:[%s4047_s1] sm:$0xff] }
   0x6   :  { %418 = vmatpush.bf16.msra.mxu0 %v2218_v7  ;;  %507 = vmatpush.bf16.msra.mxu1 %v2222_v11 }
   0xa   :  { %419 = vmatpush.bf16.msra.mxu0 %v2210_v14 }
   0xb   :  { %15 = vsyncpa [#allocation4], 0  ;;  %508 = vmatpush.bf16.msra.mxu1 %v2214_v15  ;;  %vm363_vm0 = vcmask 261120   ;;  %260 = vperm.xlu1 %2518, %v102_v16   ;;  %v100_v20 = vld [vmem:[%s4048_s2 + $0xe8] sm:$0xff]  ;;  %v99_v21 = vld [vmem:[%s4048_s2 + $0xe0] sm:$0xff]  ;;  %s2134_s20 = sshll.u32 %s4055_s9, 4  ;;  %s2135_s20 = int_to_ptr.hbm [resolvable:$true] %s2134_s20 }
   0xc   :  { %180 = vperm.xlu0 %2517, %v86_v17   ;;  %170 = vperm.xlu2 %2519, %v84_v18   ;;  %v81_v22 = vld [vmem:[%s4048_s2 + $0x50] sm:$0xff]  ;;  %v82_v24 = vld [vmem:[%s4048_s2 + $0x58] sm:$0xff]  ;;  %v2452_v26 = vld [vmem:[%s4047_s1 + $0x8] sm:$0xff]  ;;  %vm2119_vm1 = vcmask 1040384  }
   0xd   :  { %2223 = vmatmul.msk.bf16.vlgmr.msra.gmra.mxu0 %vm363_vm0, %v2451_v19  ;;  %v97_v23 = vld [vmem:[%s4048_s2 + $0xd0] sm:$0xff]  ;;  %v98_v25 = vld [vmem:[%s4048_s2 + $0xd8] sm:$0xff]  ;;  %v80_v27 = vld [vmem:[%s4048_s2 + $0x48] sm:$0xff] }
   0xe   :  { %2239 = vmatmul.msk.bf16.vlgmr.msra.gmra.mxu1 %vm363_vm0, %v2451_v19  ;;  %v95_v28 = vld [vmem:[%s4048_s2 + $0xc0] sm:$0xff]  ;;  %v77_v30 = vld [vmem:[%s4048_s2 + $0x30] sm:$0xff]  ;;  %v96_v31 = vld [vmem:[%s4048_s2 + $0xc8] sm:$0xff] }
   0xf   :  { %v79_v29 = vld [vmem:[%s4048_s2 + $0x40] sm:$0xff]  ;;  %v78_v32 = vld [vmem:[%s4048_s2 + $0x38] sm:$0xff]  ;;  %v2453_v33 = vld [vmem:[%s4047_s1 + $0x10] sm:$0xff] }
  0x10   :  { %v94_v34 = vld [vmem:[%s4048_s2 + $0xb8] sm:$0xff]  ;;  %v93_v35 = vld [vmem:[%s4048_s2 + $0xb0] sm:$0xff]  ;;  %v75_v36 = vld [vmem:[%s4048_s2 + $0x20] sm:$0xff] }
  0x11   :  { %v91_v37 = vld [vmem:[%s4048_s2 + $0xa0] sm:$0xff]  ;;  %v76_v38 = vld [vmem:[%s4048_s2 + $0x28] sm:$0xff]  ;;  %v2454_v40 = vld [vmem:[%s4047_s1 + $0x18] sm:$0xff] }
  0x12   :  { %v92_v39 = vld [vmem:[%s4048_s2 + $0xa8] sm:$0xff]  ;;  %v74_v41 = vld [vmem:[%s4048_s2 + $0x18] sm:$0xff]  ;;  %v89_v42 = vld [vmem:[%s4048_s2 + $0x90] sm:$0xff] }
  0x13   :  { %250 = vperm.xlu1 %2518, %v100_v20   ;;  %v73_v43 = vld [vmem:[%s4048_s2 + $0x10] sm:$0xff]  ;;  %v71_v44 = vld [vmem:[%s4048_s2] sm:$0xff]  ;;  %v90_v45 = vld [vmem:[%s4048_s2 + $0x98] sm:$0xff] }
  0x14   :  { %245 = vperm.xlu0 %2517, %v99_v21   ;;  %155 = vperm.xlu2 %2519, %v81_v22   ;;  %v72_v46 = vld [vmem:[%s4048_s2 + $0x8] sm:$0xff]  ;;  %v2455_v47 = vld [vmem:[%s4047_s1 + $0x20] sm:$0xff]  ;;  %v732_v50 = vld [vmem:[%s4050_s4 + $0x70] sm:$0xff] }
  0x15   :  { %v88_v48 = vld [vmem:[%s4048_s2 + $0x88] sm:$0xff]  ;;  %v87_v49 = vld [vmem:[%s4048_s2 + $0x80] sm:$0xff]  ;;  %v748_v51 = vld [vmem:[%s4050_s4 + $0xf0] sm:$0xff] }
  0x16   :  { %v733_v52 = vld [vmem:[%s4050_s4 + $0x78] sm:$0xff]  ;;  %v2456_v54 = vld [vmem:[%s4047_s1 + $0x28] sm:$0xff]  ;;  %v730_v57 = vld [vmem:[%s4050_s4 + $0x60] sm:$0xff] }
  0x17   :  { %v749_v53 = vld [vmem:[%s4050_s4 + $0xf8] sm:$0xff]  ;;  %v731_v56 = vld [vmem:[%s4050_s4 + $0x68] sm:$0xff]  ;;  %v746_v58 = vld [vmem:[%s4050_s4 + $0xe0] sm:$0xff] }
  0x18   :  { %v728_v59 = vld [vmem:[%s4050_s4 + $0x50] sm:$0xff]  ;;  %v747_v61 = vld [vmem:[%s4050_s4 + $0xe8] sm:$0xff]  ;;  %v729_v62 = vld [vmem:[%s4050_s4 + $0x58] sm:$0xff] }
  0x19   :  { %v2457_v63 = vld [vmem:[%s4047_s1 + $0x30] sm:$0xff]  ;;  %v745_v0 = vld [vmem:[%s4050_s4 + $0xd8] sm:$0xff]  ;;  %v726_v2 = vld [vmem:[%s4050_s4 + $0x40] sm:$0xff] }
  0x1a   :  { %v744_v1 = vld [vmem:[%s4050_s4 + $0xd0] sm:$0xff]  ;;  %v742_v6 = vld [vmem:[%s4050_s4 + $0xc0] sm:$0xff]  ;;  %v727_v7 = vld [vmem:[%s4050_s4 + $0x48] sm:$0xff] }
  0x1b   :  { %235 = vperm.xlu1 %2518, %v97_v23   ;;  %v743_v8 = vld [vmem:[%s4050_s4 + $0xc8] sm:$0xff]  ;;  %v2458_v9 = vld [vmem:[%s4047_s1 + $0x38] sm:$0xff]  ;;  %v724_v14 = vld [vmem:[%s4050_s4 + $0x30] sm:$0xff] }
  0x1c   :  { %160 = vperm.xlu0 %2517, %v82_v24   ;;  %240 = vperm.xlu2 %2519, %v98_v25   ;;  %v725_v13 = vld [vmem:[%s4050_s4 + $0x38] sm:$0xff]  ;;  %v740_v15 = vld [vmem:[%s4050_s4 + $0xb0] sm:$0xff]  ;;  %v722_v19 = vld [vmem:[%s4050_s4 + $0x20] sm:$0xff] }
  0x1d   :  { %2224 = vmatmul.msk.bf16.gmra.mxu0 %vm363_vm0, %v2452_v26  ;;  %v741_v20 = vld [vmem:[%s4050_s4 + $0xb8] sm:$0xff]  ;;  %v723_v21 = vld [vmem:[%s4050_s4 + $0x28] sm:$0xff]  ;;  %v2459_v22 = vld [vmem:[%s4047_s1 + $0x40] sm:$0xff] }
  0x1e   :  { %2240 = vmatmul.msk.bf16.gmra.mxu1 %vm363_vm0, %v2452_v26 }
  0x23   :  { %150 = vperm.xlu1 %2518, %v80_v27   ;;  %v739_v27 = vld [vmem:[%s4050_s4 + $0xa8] sm:$0xff] }
  0x24   :  { %225 = vperm.xlu2 %2519, %v95_v28   ;;  %145 = vperm.xlu0 %2517, %v79_v29   ;;  %v738_v29 = vld [vmem:[%s4050_s4 + $0xa0] sm:$0xff] }
  0x2b   :  { %135 = vperm.xlu1 %2518, %v77_v30   ;;  %v720_v30 = vld [vmem:[%s4050_s4 + $0x10] sm:$0xff] }
  0x2c   :  { %230 = vperm.xlu0 %2517, %v96_v31   ;;  %140 = vperm.xlu2 %2519, %v78_v32  }
  0x2d   :  { %2225 = vmatmul.msk.bf16.gmra.mxu0 %vm363_vm0, %v2453_v33 }
  0x2e   :  { %2241 = vmatmul.msk.bf16.gmra.mxu1 %vm363_vm0, %v2453_v33 }
  0x33   :  { %220 = vperm.xlu1 %2518, %v94_v34  }
  0x34   :  { %215 = vperm.xlu0 %2517, %v93_v35   ;;  %125 = vperm.xlu2 %2519, %v75_v36   ;;  %v736_v35 = vld [vmem:[%s4050_s4 + $0x90] sm:$0xff]  ;;  %v721_v36 = vld [vmem:[%s4050_s4 + $0x18] sm:$0xff] }
  0x3b   :  { %205 = vperm.xlu1 %2518, %v91_v37   ;;  %v737_v37 = vld [vmem:[%s4050_s4 + $0x98] sm:$0xff] }
  0x3c   :  { %130 = vperm.xlu0 %2517, %v76_v38   ;;  %210 = vperm.xlu2 %2519, %v92_v39   ;;  %v2460_v38 = vld [vmem:[%s4047_s1 + $0x48] sm:$0xff] }
  0x3d   :  { %2226 = vmatmul.msk.bf16.gmra.mxu0 %vm363_vm0, %v2454_v40 }
  0x3e   :  { %2242 = vmatmul.msk.bf16.gmra.mxu1 %vm363_vm0, %v2454_v40 }
  0x43   :  { %120 = vperm.xlu1 %2518, %v74_v41  }
  0x44   :  { %195 = vperm.xlu2 %2519, %v89_v42   ;;  %115 = vperm.xlu0 %2517, %v73_v43  }
  0x4b   :  { %105 = vperm.xlu1 %2518, %v71_v44   ;;  %v719_v44 = vld [vmem:[%s4050_s4 + $0x8] sm:$0xff] }
  0x4c   :  { %200 = vperm.xlu0 %2517, %v90_v45   ;;  %110 = vperm.xlu2 %2519, %v72_v46   ;;  %v718_v45 = vld [vmem:[%s4050_s4] sm:$0xff] }
  0x4d   :  { %2227 = vmatmul.msk.bf16.gmra.mxu0 %vm363_vm0, %v2455_v47  ;;  %v734_v46 = vld [vmem:[%s4050_s4 + $0x80] sm:$0xff] }
  0x4e   :  { %2243 = vmatmul.msk.bf16.gmra.mxu1 %vm363_vm0, %v2455_v47 }
  0x53   :  { %190 = vperm.xlu1 %2518, %v88_v48  }
  0x54   :  { %185 = vperm.xlu0 %2517, %v87_v49   ;;  %822 = vperm.xlu2 %2519, %v732_v50  }
  0x5b   :  { %902 = vperm.xlu1 %2518, %v748_v51  }
  0x5c   :  { %827 = vperm.xlu0 %2517, %v733_v52   ;;  %907 = vperm.xlu2 %2519, %v749_v53   ;;  %v1538_v52 = vld [vmem:[%s4052_s6] sm:$0xff]  ;;  %v735_v53 = vld [vmem:[%s4050_s4 + $0x88] sm:$0xff] }
  0x5d   :  { %2228 = vmatmul.msk.bf16.gmra.mxu0 %vm363_vm0, %v2456_v54  ;;  %v2760_v55 = vpop.permute.xlu2 %165 }
  0x5e   :  { %2244 = vmatmul.msk.bf16.gmra.mxu1 %vm363_vm0, %v2456_v54  ;;  %v1539_v54 = vld [vmem:[%s4052_s6 + $0x8] sm:$0xff] }
  0x63   :  { %817 = vperm.xlu1 %2518, %v731_v56   ;;  %v2461_v56 = vld [vmem:[%s4047_s1 + $0x50] sm:$0xff] }
  0x64   :  { %812 = vperm.xlu0 %2517, %v730_v57   ;;  %892 = vperm.xlu2 %2519, %v746_v58  }
  0x66   :  { %v2774_v60 = vpop.permute.xlu2 %170 }
  0x6b   :  { %802 = vperm.xlu1 %2518, %v728_v59  }
  0x6c   :  { %897 = vperm.xlu0 %2517, %v747_v61   ;;  %807 = vperm.xlu2 %2519, %v729_v62  }
  0x6d   :  { %2229 = vmatmul.msk.bf16.gmra.mxu0 %vm363_vm0, %v2457_v63 }
  0x6e   :  { %2245 = vmatmul.msk.bf16.gmra.mxu1 %vm363_vm0, %v2457_v63  ;;  %v2796_v3 = vpop.permute.xlu2 %155  ;;  %v1541_v63 = vld [vmem:[%s4052_s6 + $0x18] sm:$0xff] }
  0x73   :  { %887 = vperm.xlu1 %2518, %v745_v0  }
  0x74   :  { %882 = vperm.xlu0 %2517, %v744_v1   ;;  %792 = vperm.xlu2 %2519, %v726_v2   ;;  %v2798_v4 = vpop.permute.xlu1 %255  ;;  %v1540_v1 = vld [vmem:[%s4052_s6 + $0x10] sm:$0xff]  ;;  %v1542_v2 = vld [vmem:[%s4052_s6 + $0x20] sm:$0xff] }
  0x75   :  { %v2800_v5 = vpop.permute.xlu0 %175 }
  0x76   :  { %v2814_v10 = vpop.permute.xlu2 %240 }
  0x7b   :  { %872 = vperm.xlu1 %2518, %v742_v6  }
  0x7c   :  { %797 = vperm.xlu0 %2517, %v727_v7   ;;  %877 = vperm.xlu2 %2519, %v743_v8  }
  0x7d   :  { %2230 = vmatmul.msk.bf16.gmra.mxu0 %vm363_vm0, %v2458_v9  ;;  %v2818_v11 = vpop.permute.xlu1 %260 }
  0x7e   :  { %2246 = vmatmul.msk.bf16.gmra.mxu1 %vm363_vm0, %v2458_v9  ;;  %v2820_v12 = vpop.permute.xlu0 %180  ;;  %v2835_v18 = vpop.permute.xlu2 %225 }
  0x83   :  { %787 = vperm.xlu1 %2518, %v725_v13  }
  0x84   :  { %782 = vperm.xlu0 %2517, %v724_v14   ;;  %862 = vperm.xlu2 %2519, %v740_v15  }
  0x85   :  { %v2831_v16 = vpop.permute.xlu1 %250 }
  0x86   :  { %v2833_v17 = vpop.permute.xlu0 %245  ;;  %v2862_v28 = vpop.permute.xlu2 %140 }
  0x8a   :  { %v2849_v23 = vpop.f32.mrf.mxu0 }
  0x8b   :  { %v2851_v24 = vpop.f32.mrf.mxu1  ;;  %772 = vperm.xlu1 %2518, %v722_v19  }
  0x8c   :  { %867 = vperm.xlu0 %2517, %v741_v20   ;;  %777 = vperm.xlu2 %2519, %v723_v21  }
  0x8d   :  { %2231 = vmatmul.msk.bf16.gmra.mxu0 %vm363_vm0, %v2459_v22  ;;  %v2855_v25 = vpop.permute.xlu1 %235 }
  0x8e   :  { %2247 = vmatmul.msk.bf16.gmra.mxu1 %vm363_vm0, %v2459_v22  ;;  %v2857_v26 = vpop.permute.xlu0 %160  ;;  %v2892_v41 = vpop.permute.xlu2 %125 }
  0x92   :  { %v2870_v31 = vpop.f32.mrf.mxu0 }
  0x93   :  { %v2872_v32 = vpop.f32.mrf.mxu1  ;;  %857 = vperm.xlu1 %2518, %v739_v27   ;;  %v1544_v27 = vld [vmem:[%s4052_s6 + $0x30] sm:$0xff] }
  0x94   :  { %852 = vperm.xlu0 %2517, %v738_v29   ;;  %762 = vperm.xlu2 %2519, %v720_v30  }
  0x95   :  { %v2874_v33 = vpop.permute.xlu1 %150 }
  0x96   :  { %v2876_v34 = vpop.permute.xlu0 %145  ;;  %v2911_v49 = vpop.permute.xlu2 %210 }
  0x9a   :  { %v426_v39 = vpop.f32.mrf.mxu0 }
  0x9b   :  { %v2890_v40 = vpop.f32.mrf.mxu1  ;;  %842 = vperm.xlu1 %2518, %v736_v35   ;;  %v1543_v35 = vld [vmem:[%s4052_s6 + $0x28] sm:$0xff] }
  0x9c   :  { %767 = vperm.xlu0 %2517, %v721_v36   ;;  %847 = vperm.xlu2 %2519, %v737_v37   ;;  %v1545_v36 = vld [vmem:[%s4052_s6 + $0x38] sm:$0xff] }
  0x9d   :  { %2232 = vmatmul.msk.bf16.gmra.mxu0 %vm363_vm0, %v2460_v38  ;;  %v2896_v42 = vpop.permute.xlu1 %135  ;;  %v2462_v37 = vld [vmem:[%s4047_s1 + $0x58] sm:$0xff] }
  0x9e   :  { %2248 = vmatmul.msk.bf16.gmra.mxu1 %vm363_vm0, %v2460_v38  ;;  %v2898_v43 = vpop.permute.xlu0 %230  ;;  %v2937_v62 = vpop.permute.xlu2 %195 }
  0xa2   :  { %v428_v47 = vpop.f32.mrf.mxu0 }
  0xa3   :  { %v2909_v48 = vpop.f32.mrf.mxu1  ;;  %757 = vperm.xlu1 %2518, %v719_v44  }
  0xa4   :  { %752 = vperm.xlu0 %2517, %v718_v45   ;;  %832 = vperm.xlu2 %2519, %v734_v46  }
  0xa5   :  { %v2913_v50 = vpop.permute.xlu1 %220 }
  0xa6   :  { %v2915_v51 = vpop.permute.xlu0 %215  ;;  %v2963_v29 = vpop.permute.xlu2 %110 }
  0xa7   :  { %v424_v45 = vadd.f32 %v2870_v31, %v2963_v29  ;;  %v1546_v31 = vld [vmem:[%s4052_s6 + $0x40] sm:$0xff] }
  0xaa   :  { %v431_v57 = vpop.f32.mrf.mxu0 }
  0xab   :  { %v2929_v58 = vpop.f32.mrf.mxu1  ;;  %1556 = vperm.xlu1 %2518, %v1538_v52   ;;  %v432_v0 = vadd.f32 %v431_v57, %v2892_v41  ;;  %v592_v52 = vmax.f32 %v424_v45, 0.0  ;;  %v1548_v57 = vld [vmem:[%s4052_s6 + $0x50] sm:$0xff] }
  0xac   :  { %837 = vperm.xlu0 %2517, %v735_v53   ;;  %1561 = vperm.xlu2 %2519, %v1539_v54   ;;  %v1547_v54 = vld [vmem:[%s4052_s6 + $0x48] sm:$0xff]  ;;  %v1944_v45 = vld [vmem:[%s4053_s7 + $0x10] sm:$0xff] }
  0xad   :  { %2233 = vmatmul.msk.bf16.gmra.mxu0 %vm363_vm0, %v2461_v56  ;;  %v2933_v59 = vpop.permute.xlu1 %205  ;;  %v598_v9 = vmax.f32 %v432_v0, 0.0 }
  0xae   :  { %2249 = vmatmul.msk.bf16.gmra.mxu1 %vm363_vm0, %v2461_v56  ;;  %v2935_v61 = vpop.permute.xlu0 %130 }
  0xb2   :  { %v433_v6 = vpop.f32.mrf.mxu0 }
  0xb3   :  { %v2949_v7 = vpop.f32.mrf.mxu1  ;;  %v434_v8 = vadd.f32 %v433_v6, %v2935_v61  ;;  %1571 = vperm.xlu1 %2518, %v1541_v63  }
  0xb4   :  { %1566 = vperm.xlu0 %2517, %v1540_v1   ;;  %1576 = vperm.xlu2 %2519, %v1542_v2  }
  0xb5   :  { %v600_v13 = vmax.f32 %v434_v8, 0.0  ;;  %v2952_v14 = vpop.permute.xlu1 %120 }
  0xb6   :  { %v429_v15 = vadd.f32 %v428_v47, %v2952_v14  ;;  %v2955_v19 = vpop.permute.xlu0 %115 }
  0xb7   :  { %v427_v20 = vadd.f32 %v426_v39, %v2955_v19  ;;  %v2958_v21 = vpack.c.bf16 %v600_v13, %v598_v9  ;;  %v1550_v9 = vld [vmem:[%s4052_s6 + $0x60] sm:$0xff]  ;;  %v1549_v13 = vld [vmem:[%s4052_s6 + $0x58] sm:$0xff] }
  0xb8   :  { %v596_v22 = vmax.f32 %v429_v15, 0.0  ;;  %v1551_v15 = vld [vmem:[%s4052_s6 + $0x68] sm:$0xff] }
  0xb9   :  { %v594_v30 = vmax.f32 %v427_v20, 0.0  ;;  %v2463_v20 = vld [vmem:[%s4047_s1 + $0x60] sm:$0xff] }
  0xba   :  { %v436_v38 = vpop.f32.mrf.mxu0 }
  0xbb   :  { %v2974_v39 = vpop.f32.mrf.mxu1  ;;  %1586 = vperm.xlu1 %2518, %v1544_v27   ;;  %v2976_v44 = vpack.c.bf16 %v596_v22, %v594_v30  ;;  %v437_v56 = vadd.f32 %v436_v38, %v2896_v42  ;;  %v1553_v30 = vld [vmem:[%s4052_s6 + $0x78] sm:$0xff] }
  0xbc   :  { %1581 = vperm.xlu0 %2517, %v1543_v35   ;;  %1591 = vperm.xlu2 %2519, %v1545_v36   ;;  %v1552_v35 = vld [vmem:[%s4052_s6 + $0x70] sm:$0xff]  ;;  %v1942_v36 = vld [vmem:[%s4053_s7] sm:$0xff] }
  0xbd   :  { %2234 = vmatmul.msk.bf16.gmra.mxu0 %vm363_vm0, %v2462_v37  ;;  %v2982_v46 = vpop.permute.xlu1 %105  ;;  %v602_v2 = vmax.f32 %v437_v56, 0.0 }
  0xbe   :  { %2250 = vmatmul.msk.bf16.gmra.mxu1 %vm363_vm0, %v2462_v37  ;;  %v422_v47 = vadd.f32 %v2849_v23, %v2982_v46 }
  0xc0   :  { %v590_v53 = vmax.f32 %v422_v47, 0.0  ;;  %v1943_v47 = vld [vmem:[%s4053_s7 + $0x8] sm:$0xff] }
  0xc2   :  { %v438_v63 = vpop.f32.mrf.mxu0  ;;  %v2996_v1 = vpack.c.bf16 %v592_v52, %v590_v53  ;;  %v1945_v52 = vld [vmem:[%s4053_s7 + $0x18] sm:$0xff]  ;;  %v2464_v53 = vld [vmem:[%s4047_s1 + $0x68] sm:$0xff] }
  0xc3   :  { %v527_v0 = vpop.f32.mrf.mxu1  ;;  %v439_v23 = vadd.f32 %v438_v63, %v2862_v28  ;;  %1601 = vperm.xlu1 %2518, %v1547_v54   ;;  %v1948_v63 = vld [vmem:[%s4053_s7 + $0x30] sm:$0xff] }
  0xc4   :  { %1596 = vperm.xlu0 %2517, %v1546_v31   ;;  %1606 = vperm.xlu2 %2519, %v1548_v57   ;;  %v1947_v31 = vld [vmem:[%s4053_s7 + $0x28] sm:$0xff]  ;;  %v1946_v57 = vld [vmem:[%s4053_s7 + $0x20] sm:$0xff] }
  0xc5   :  { %v604_v6 = vmax.f32 %v439_v23, 0.0 }
  0xc7   :  { %v2999_v8 = vpack.c.bf16 %v604_v6, %v602_v2  ;;  %v1950_v6 = vld [vmem:[%s4053_s7 + $0x40] sm:$0xff] }
  0xca   :  { %v3013_v22 = vpop.f32.mrf.mxu0 }
  0xcb   :  { %v3015_v27 = vpop.f32.mrf.mxu1  ;;  %1616 = vperm.xlu1 %2518, %v1550_v9   ;;  %v1949_v9 = vld [vmem:[%s4053_s7 + $0x38] sm:$0xff] }
  0xcc   :  { %1611 = vperm.xlu0 %2517, %v1549_v13   ;;  %1621 = vperm.xlu2 %2519, %v1551_v15   ;;  %v1951_v13 = vld [vmem:[%s4053_s7 + $0x48] sm:$0xff]  ;;  %v2465_v15 = vld [vmem:[%s4047_s1 + $0x70] sm:$0xff] }
  0xcd   :  { %2235 = vmatmul.msk.bf16.gmra.mxu0 %vm363_vm0, %v2463_v20 }
  0xce   :  { %2251 = vmatmul.msk.bf16.gmra.mxu1 %vm363_vm0, %v2463_v20 }
  0xd2   :  { %v3028_v37 = vpop.f32.mrf.mxu0 }
  0xd3   :  { %v3030_v38 = vpop.f32.mrf.mxu1  ;;  %1631 = vperm.xlu1 %2518, %v1553_v30  }
  0xd4   :  { %1626 = vperm.xlu0 %2517, %v1552_v35   ;;  %1960 = vperm.xlu2 %2519, %v1942_v36   ;;  %v513_v35 = vadd.f32 %v2872_v32, %v2963_v29  ;;  %v511_v36 = vadd.f32 %v2851_v24, %v2982_v46  ;;  %v1952_v32 = vld [vmem:[%s4053_s7 + $0x50] sm:$0xff]  ;;  %v1954_v24 = vld [vmem:[%s4053_s7 + $0x60] sm:$0xff]  ;;  %v521_v29 = vadd.f32 %v2929_v58, %v2892_v41 }
  0xd5   :  { %v516_v41 = vadd.f32 %v2890_v40, %v2955_v19 }
  0xda   :  { %v3044_v54 = vpop.f32.mrf.mxu0 }
  0xdb   :  { %v3046_v56 = vpop.f32.mrf.mxu1  ;;  %1970 = vperm.xlu1 %2518, %v1944_v45   ;;  %v526_v45 = vadd.f32 %v2974_v39, %v2896_v42 }
  0xdc   :  { %1965 = vperm.xlu0 %2517, %v1943_v47   ;;  %1975 = vperm.xlu2 %2519, %v1945_v52   ;;  %v528_v47 = vadd.f32 %v527_v0, %v2862_v28  ;;  %v1953_v52 = vld [vmem:[%s4053_s7 + $0x58] sm:$0xff]  ;;  %v523_v28 = vadd.f32 %v2949_v7, %v2935_v61  ;;  %v1956_v61 = vld [vmem:[%s4053_s7 + $0x70] sm:$0xff]  ;;  %v1955_v7 = vld [vmem:[%s4053_s7 + $0x68] sm:$0xff] }
  0xdd   :  { %2236 = vmatmul.msk.bf16.gmra.mxu0 %vm363_vm0, %v2464_v53  ;;  %v603_v46 = vmax.f32 %v526_v45, 0.0 }
  0xde   :  { %2252 = vmatmul.msk.bf16.gmra.mxu1 %vm363_vm0, %v2464_v53  ;;  %v593_v53 = vmax.f32 %v513_v35, 0.0  ;;  %v605_v0 = vmax.f32 %v528_v47, 0.0 }
  0xe0   :  { %v3103_v58 = vpack.c.bf16 %v605_v0, %v603_v46  ;;  %v536_v0 = vadd.f32 %v3046_v56, %v2796_v3  ;;  %v533_v56 = vadd.f32 %v3030_v38, %v2874_v33  ;;  %v442_v38 = vadd.f32 %v3013_v22, %v2876_v34 }
  0xe2   :  { %v3059_v23 = vpop.f32.mrf.mxu0 }
  0xe3   :  { %v3061_v2 = vpop.f32.mrf.mxu1  ;;  %1985 = vperm.xlu1 %2518, %v1947_v31   ;;  %v591_v31 = vmax.f32 %v511_v36, 0.0 }
  0xe4   :  { %1980 = vperm.xlu0 %2517, %v1946_v57   ;;  %1990 = vperm.xlu2 %2519, %v1948_v63   ;;  %v599_v63 = vmax.f32 %v521_v29, 0.0 }
  0xe5   :  { %v3097_v57 = vpack.c.bf16 %v593_v53, %v591_v31 }
  0xea   :  { %v451_v20 = vpop.f32.mrf.mxu0 }
  0xeb   :  { %v540_v30 = vpop.f32.mrf.mxu1  ;;  %2000 = vperm.xlu1 %2518, %v1950_v6   ;;  %v601_v6 = vmax.f32 %v523_v28, 0.0 }
  0xec   :  { %1995 = vperm.xlu0 %2517, %v1949_v9   ;;  %2005 = vperm.xlu2 %2519, %v1951_v13   ;;  %v518_v9 = vadd.f32 %v2909_v48, %v2952_v14  ;;  %v1957_v13 = vld [vmem:[%s4053_s7 + $0x78] sm:$0xff]  ;;  %v541_v47 = vadd.f32 %v540_v30, %v2760_v55  ;;  %v452_v30 = vadd.f32 %v451_v20, %v2760_v55  ;;  %s2547_s7 = smov [#allocation3]  }
  0xed   :  { %2237 = vmatmul.msk.bf16.gmra.mxu0 %vm363_vm0, %v2465_v15  ;;  %v2466_v48 = vld [vmem:[%s4047_s1 + $0x78] sm:$0xff]  ;;  %v3117_v35 = vpack.c.bf16 %v601_v6, %v599_v63  ;;  %v538_v63 = vadd.f32 %v3061_v2, %v2857_v26  ;;  %v447_v55 = vadd.f32 %v3044_v54, %v2796_v3  ;;  %v611_v2 = vmax.f32 %v536_v0, 0.0  ;;  %s2132_s18 = sshll.u32 %s2547_s7, 4  ;;  %s2133_s18 = int_to_ptr.vmem [resolvable:$true] %s2132_s18 }
  0xee   :  { %2253 = vmatmul.msk.bf16.gmra.mxu1 %vm363_vm0, %v2465_v15  ;;  %v597_v19 = vmax.f32 %v518_v9, 0.0  ;;  %v595_v15 = vmax.f32 %v516_v41, 0.0  ;;  %v609_v3 = vmax.f32 %v533_v56, 0.0 }
  0xef   :  { %v613_v20 = vmax.f32 %v538_v63, 0.0  ;;  %v610_v54 = vmax.f32 %v447_v55, 0.0  ;;  %v2273_v63 = vld [vmem:[%s4049_s3 + $0x20] sm:$0xf] }
  0xf0   :  { %v689_v45 = vpack.c.bf16 %v597_v19, %v595_v15 }
  0xf1   :  { %v697_v15 = vpack.c.bf16 %v613_v20, %v611_v2  ;;  %v2289_v2 = vld [vmem:[%s4049_s3 + $0x40] sm:$0xf]  ;;  %v2476_v20 = vld [vmem:[%s4049_s3 + $0x44] sm:$0xf0] }
  0xf2   :  { %v453_v42 = vpop.f32.mrf.mxu0 }
  0xf3   :  { %v542_v39 = vpop.f32.mrf.mxu1  ;;  %2015 = vperm.xlu1 %2518, %v1953_v52  }
  0xf4   :  { %2010 = vperm.xlu0 %2517, %v1952_v32   ;;  %2020 = vperm.xlu2 %2519, %v1954_v24   ;;  %v543_v52 = vadd.f32 %v542_v39, %v2774_v60  ;;  %v454_v24 = vadd.f32 %v453_v42, %v2774_v60  ;;  %v615_v39 = vmax.f32 %v541_v47, 0.0  ;;  %v449_v60 = vadd.f32 %v3059_v23, %v2857_v26 }
  0xf5   :  { %v444_v23 = vadd.f32 %v3028_v37, %v2874_v33 }
  0xf6   :  { %v617_v6 = vmax.f32 %v543_v52, 0.0  ;;  %v616_v42 = vmax.f32 %v454_v24, 0.0  ;;  %v606_v52 = vmax.f32 %v442_v38, 0.0  ;;  %v2297_v38 = vld [vmem:[%s4049_s3 + $0x50] sm:$0xf] }
  0xfa   :  { %v456_v14 = vpop.f32.mrf.mxu0 }
  0xfb   :  { %v545_v40 = vpop.f32.mrf.mxu1  ;;  %2030 = vperm.xlu1 %2518, %v1956_v61   ;;  %v457_v53 = vadd.f32 %v456_v14, %v2800_v5 }
  0xfc   :  { %2025 = vperm.xlu0 %2517, %v1955_v7   ;;  %2035 = vperm.xlu2 %2519, %v1957_v13   ;;  %v546_v36 = vadd.f32 %v545_v40, %v2800_v5  ;;  %v614_v13 = vmax.f32 %v452_v30, 0.0  ;;  %v2472_v30 = vld [vmem:[%s4049_s3 + $0x24] sm:$0xf0] }
  0xfd   :  { %2238 = vmatmul.msk.bf16.gmra.mxu0 %vm363_vm0, %v2466_v48  ;;  %v618_v5 = vmax.f32 %v457_v53, 0.0 }
  0xfe   :  { %2254 = vmatmul.msk.bf16.gmra.mxu1 %vm363_vm0, %v2466_v48  ;;  %v619_v29 = vmax.f32 %v546_v36, 0.0  ;;  %v699_v48 = vpack.c.bf16 %v617_v6, %v615_v39  ;;  %v698_v40 = vpack.c.bf16 %v616_v42, %v614_v13  ;;  %v608_v36 = vmax.f32 %v444_v23, 0.0  ;;  %v2474_v42 = vld [vmem:[%s4049_s3 + $0x34] sm:$0xf0] }
  0xff   :  { %v2290_v23 = vor.u32 %v2476_v20, %v2289_v2 }
 0x100   :  { %v694_v37 = vpack.c.bf16 %v608_v36, %v606_v52 }
 0x102   :  { %v458_v31 = vpop.f32.mrf.mxu0 }
 0x103   :  { %v547_v32 = vpop.f32.mrf.mxu1  ;;  %v459_v28 = vadd.f32 %v458_v31, %v2820_v12 }
 0x104   :  { %v548_v46 = vadd.f32 %v547_v32, %v2820_v12  ;;  %v531_v12 = vadd.f32 %v3015_v27, %v2876_v34  ;;  %v612_v27 = vmax.f32 %v449_v60, 0.0  ;;  %v2257_v32 = vld [vmem:[%s4049_s3] sm:$0xf]  ;;  %v2281_v60 = vld [vmem:[%s4049_s3 + $0x30] sm:$0xf] }
 0x105   :  { %v620_v41 = vmax.f32 %v459_v28, 0.0 }
 0x106   :  { %v621_v9 = vmax.f32 %v548_v46, 0.0  ;;  %v607_v19 = vmax.f32 %v531_v12, 0.0  ;;  %v696_v47 = vpack.c.bf16 %v612_v27, %v610_v54  ;;  %v2282_v12 = vor.u32 %v2474_v42, %v2281_v60 }
 0x107   :  { %v700_v61 = vpack.c.bf16 %v620_v41, %v618_v5  ;;  %v2274_v5 = vor.u32 %v2472_v30, %v2273_v63 }
 0x108   :  { %v701_v7 = vpack.c.bf16 %v621_v9, %v619_v29  ;;  %v695_v53 = vpack.c.bf16 %v609_v3, %v607_v19  ;;  %v2478_v19 = vld [vmem:[%s4049_s3 + $0x54] sm:$0xf0] }
 0x109   :  { %1070 = vmatpush.bf16.msra.mxu2 %v700_v61 }
 0x10a   :  { %1248 = vmatpush.bf16.msrb.mxu0 %v701_v7  ;;  %v3141_v14 = vpop.f32.mrf.mxu0 }
 0x10b   :  { %v3143_v26 = vpop.f32.mrf.mxu1 }
 0x10d   :  { %1071 = vmatpush.bf16.msra.mxu2 %v698_v40 }
 0x10e   :  { %1249 = vmatpush.bf16.msrb.mxu0 %v699_v48 }
 0x111   :  { %1072 = vmatpush.bf16.msra.mxu2 %v696_v47 }
 0x112   :  { %1250 = vmatpush.bf16.msrb.mxu0 %v697_v15  ;;  %v3149_v31 = vpop.f32.mrf.mxu0  ;;  %v2298_v15 = vor.u32 %v2478_v19, %v2297_v38 }
 0x113   :  { %v3151_v33 = vpop.f32.mrf.mxu1 }
 0x115   :  { %1073 = vmatpush.bf16.msra.mxu2 %v694_v37  ;;  %v2305_v37 = vld [vmem:[%s4049_s3 + $0x60] sm:$0xf] }
 0x116   :  { %1251 = vmatpush.bf16.msrb.mxu0 %v695_v53 }
 0x119   :  { %1074 = vmatpush.bf16.msra.mxu2 %v2999_v8  ;;  %v2468_v8 = vld [vmem:[%s4049_s3 + $0x4] sm:$0xf0] }
 0x11a   :  { %1252 = vmatpush.bf16.msrb.mxu0 %v3103_v58  ;;  %v3155_v34 = vpop.f32.mrf.mxu0  ;;  %v2258_v29 = vor.u32 %v2468_v8, %v2257_v32  ;;  %v2480_v32 = vld [vmem:[%s4049_s3 + $0x64] sm:$0xf0] }
 0x11b   :  { %v3157_v22 = vpop.f32.mrf.mxu1 }
 0x11d   :  { %1075 = vmatpush.bf16.msra.mxu2 %v2958_v21 }
 0x11e   :  { %1253 = vmatpush.bf16.msrb.mxu0 %v3117_v35  ;;  %v2265_v35 = vld [vmem:[%s4049_s3 + $0x10] sm:$0xf] }
 0x121   :  { %1076 = vmatpush.bf16.msra.mxu2 %v2976_v44 }
 0x122   :  { %1254 = vmatpush.bf16.msrb.mxu0 %v689_v45  ;;  %v3168_v58 = vpop.f32.mrf.mxu0  ;;  %v2470_v45 = vld [vmem:[%s4049_s3 + $0x14] sm:$0xf0] }
 0x123   :  { %v3170_v24 = vpop.f32.mrf.mxu1 }
 0x125   :  { %1077 = vmatpush.bf16.msra.mxu2 %v2996_v1  ;;  %v2266_v1 = vor.u32 %v2470_v45, %v2265_v35 }
 0x126   :  { %1255 = vmatpush.bf16.msrb.mxu0 %v3097_v57 }
 0x128   :  { %1078 = vmatmul.bf16.vlgmr.msra.gmra.mxu2 %v2258_v29 }
 0x129   :  { %1256 = vmatmul.bf16.vlgmr.msrb.gmra.mxu0 %v2258_v29 }
 0x12a   :  { %v3174_v21 = vpop.f32.mrf.mxu0 }
 0x12b   :  { %v3176_v44 = vpop.f32.mrf.mxu1 }
 0x132   :  { %v3184_v28 = vpop.f32.mrf.mxu0 }
 0x133   :  { %v3186_v46 = vpop.f32.mrf.mxu1 }
 0x138   :  { %1083 = vmatmul.bf16.gmra.mxu2 %v2266_v1 }
 0x139   :  { %1261 = vmatmul.bf16.gmra.mxu0 %v2266_v1 }
 0x13a   :  { %v3188_v57 = vpop.f32.mrf.mxu0 }
 0x13b   :  { %v3190_v0 = vpop.f32.mrf.mxu1 }
 0x142   :  { %v3198_v39 = vpop.f32.mrf.mxu0 }
 0x143   :  { %v3200_v6 = vpop.f32.mrf.mxu1 }
 0x148   :  { %1088 = vmatmul.bf16.gmra.mxu2 %v2274_v5 }
 0x149   :  { %1266 = vmatmul.bf16.gmra.mxu0 %v2274_v5  ;;  %v2306_v5 = vor.u32 %v2480_v32, %v2305_v37 }
 0x14a   :  { %v3202_v9 = vpop.f32.mrf.mxu0 }
 0x14b   :  { %v570_v41 = vpop.f32.mrf.mxu1 }
 0x152   :  { %v483_v61 = vpop.f32.mrf.mxu0 }
 0x153   :  { %v572_v7 = vpop.f32.mrf.mxu1 }
 0x158   :  { %1093 = vmatmul.bf16.gmra.mxu2 %v2282_v12 }
 0x159   :  { %1271 = vmatmul.bf16.gmra.mxu0 %v2282_v12 }
 0x15a   :  { %v486_v56 = vpop.f32.mrf.mxu0 }
 0x15b   :  { %v575_v55 = vpop.f32.mrf.mxu1 }
 0x162   :  { %v488_v13 = vpop.f32.mrf.mxu0 }
 0x163   :  { %v577_v48 = vpop.f32.mrf.mxu1  ;;  %v489_v20 = vadd.f32 %v488_v13, %v2814_v10  ;;  %v484_v13 = vadd.f32 %v483_v61, %v2898_v43 }
 0x168   :  { %1098 = vmatmul.bf16.gmra.mxu2 %v2290_v23 }
 0x169   :  { %1276 = vmatmul.bf16.gmra.mxu0 %v2290_v23  ;;  %v578_v23 = vadd.f32 %v577_v48, %v2814_v10  ;;  %v573_v10 = vadd.f32 %v572_v7, %v2898_v43  ;;  %v644_v48 = vmax.f32 %v489_v20, 0.0  ;;  %v568_v43 = vadd.f32 %v3200_v6, %v2913_v50  ;;  %v201_v7 = vpop.permute.xlu0 %200  ;;  %v191_v20 = vpop.permute.xlu1 %190 }
 0x16a   :  { %v491_v27 = vpop.f32.mrf.mxu0  ;;  %v474_v6 = vadd.f32 %v3184_v28, %v2911_v49  ;;  %v469_v28 = vadd.f32 %v3168_v58, %v201_v7  ;;  %v464_v58 = vadd.f32 %v3149_v31, %v191_v20  ;;  %v2321_v31 = vld [vmem:[%s4049_s3 + $0x80] sm:$0xf] }
 0x16b   :  { %v580_v40 = vpop.f32.mrf.mxu1  ;;  %v641_v37 = vmax.f32 %v573_v10, 0.0 }
 0x16c   :  { %v581_v30 = vadd.f32 %v580_v40, %v2833_v17 }
 0x16e   :  { %v647_v40 = vmax.f32 %v581_v30, 0.0 }
 0x172   :  { %v493_v3 = vpop.f32.mrf.mxu0 }
 0x173   :  { %v582_v54 = vpop.f32.mrf.mxu1  ;;  %v494_v35 = vadd.f32 %v493_v3, %v2831_v16 }
 0x174   :  { %v583_v45 = vadd.f32 %v582_v54, %v2831_v16  ;;  %v571_v54 = vadd.f32 %v570_v41, %v2835_v18  ;;  %v479_v41 = vadd.f32 %v3198_v39, %v2913_v50  ;;  %v2482_v50 = vld [vmem:[%s4049_s3 + $0x74] sm:$0xf0]  ;;  %v561_v39 = vadd.f32 %v3176_v44, %v2933_v59 }
 0x175   :  { %v648_v38 = vmax.f32 %v494_v35, 0.0  ;;  %v637_v35 = vmax.f32 %v568_v43, 0.0  ;;  %v556_v44 = vadd.f32 %v3157_v22, %v2937_v62  ;;  %v2337_v43 = vld [vmem:[%s4049_s3 + $0xa0] sm:$0xf] }
 0x176   :  { %v649_v19 = vmax.f32 %v583_v45, 0.0  ;;  %v639_v61 = vmax.f32 %v571_v54, 0.0 }
 0x178   :  { %1103 = vmatmul.bf16.gmra.mxu2 %v2298_v15 }
 0x179   :  { %1281 = vmatmul.bf16.gmra.mxu0 %v2298_v15  ;;  %v645_v15 = vmax.f32 %v578_v23, 0.0  ;;  %v627_v23 = vmax.f32 %v556_v44, 0.0  ;;  %v2492_v44 = vld [vmem:[%s4049_s3 + $0xc4] sm:$0xf0] }
 0x17a   :  { %v496_v36 = vpop.f32.mrf.mxu0 }
 0x17b   :  { %v585_v47 = vpop.f32.mrf.mxu1  ;;  %v497_v52 = vadd.f32 %v496_v36, %v2798_v4 }
 0x17c   :  { %v586_v53 = vadd.f32 %v585_v47, %v2798_v4  ;;  %v492_v4 = vadd.f32 %v491_v27, %v2833_v17  ;;  %v576_v27 = vadd.f32 %v575_v55, %v2855_v25  ;;  %v715_v47 = vpack.c.bf16 %v649_v19, %v647_v40 }
 0x17d   :  { %v650_v60 = vmax.f32 %v497_v52, 0.0  ;;  %v482_v52 = vadd.f32 %v3202_v9, %v2835_v18  ;;  %v640_v55 = vmax.f32 %v484_v13, 0.0  ;;  %v477_v18 = vadd.f32 %v3188_v57, %v2915_v51  ;;  %v2259_v13 = vld [vmem:[%s4049_s3 + $0x8] sm:$0xf0] }
 0x17e   :  { %v651_v42 = vmax.f32 %v586_v53, 0.0  ;;  %v646_v17 = vmax.f32 %v492_v4, 0.0  ;;  %v643_v53 = vmax.f32 %v576_v27, 0.0  ;;  %v472_v4 = vadd.f32 %v3174_v21, %v2933_v59 }
 0x17f   :  { %v638_v9 = vmax.f32 %v482_v52, 0.0  ;;  %v634_v30 = vmax.f32 %v477_v18, 0.0  ;;  %v467_v59 = vadd.f32 %v3155_v34, %v2937_v62  ;;  %v624_v34 = vmax.f32 %v464_v58, 0.0  ;;  %v2486_v52 = vld [vmem:[%s4049_s3 + $0x94] sm:$0xf0] }
 0x180   :  { %v714_v36 = vpack.c.bf16 %v648_v38, %v646_v17  ;;  %v630_v21 = vmax.f32 %v472_v4, 0.0  ;;  %v628_v38 = vmax.f32 %v469_v28, 0.0  ;;  %v2345_v18 = vld [vmem:[%s4049_s3 + $0xb0] sm:$0xf]  ;;  %v2475_v28 = vld [vmem:[%s4049_s3 + $0x44] sm:$0xf] }
 0x181   :  { %v710_v45 = vpack.c.bf16 %v640_v55, %v638_v9  ;;  %v626_v27 = vmax.f32 %v467_v59, 0.0  ;;  %v2275_v55 = vld [vmem:[%s4049_s3 + $0x28] sm:$0xf0]  ;;  %v2490_v9 = vld [vmem:[%s4049_s3 + $0xb4] sm:$0xf0] }
 0x182   :  { %v498_v8 = vpop.f32.mrf.mxu0  ;;  %v2361_v58 = vld [vmem:[%s4049_s3 + $0xd0] sm:$0xf] }
 0x183   :  { %v587_v29 = vpop.f32.mrf.mxu1  ;;  %v499_v1 = vadd.f32 %v498_v8, %v2818_v11  ;;  %v713_v8 = vpack.c.bf16 %v645_v15, %v643_v53  ;;  %v704_v40 = vpack.c.bf16 %v628_v38, %v626_v27  ;;  %v2267_v53 = vld [vmem:[%s4049_s3 + $0x18] sm:$0xf0]  ;;  %v2477_v38 = vld [vmem:[%s4049_s3 + $0x54] sm:$0xf] }
 0x184   :  { %v588_v63 = vadd.f32 %v587_v29, %v2818_v11  ;;  %v487_v11 = vadd.f32 %v486_v56, %v2855_v25  ;;  %v566_v25 = vadd.f32 %v3190_v0, %v2915_v51  ;;  %v2313_v0 = vld [vmem:[%s4049_s3 + $0x70] sm:$0xf]  ;;  %v563_v51 = vadd.f32 %v3186_v46, %v2911_v49 }
 0x185   :  { %v652_v2 = vmax.f32 %v499_v1, 0.0  ;;  %v636_v29 = vmax.f32 %v479_v41, 0.0  ;;  %v711_v1 = vpack.c.bf16 %v641_v37, %v639_v61  ;;  %v631_v49 = vmax.f32 %v561_v39, 0.0  ;;  %v2488_v61 = vld [vmem:[%s4049_s3 + $0xa4] sm:$0xf0]  ;;  %v3327_v39 = vpop.permute.xlu1 %902 }
 0x186   :  { %v653_v12 = vmax.f32 %v588_v63, 0.0  ;;  %v642_v56 = vmax.f32 %v487_v11, 0.0  ;;  %v635_v57 = vmax.f32 %v566_v25, 0.0  ;;  %v2314_v63 = vor.u32 %v2482_v50, %v2313_v0  ;;  %v2473_v0 = vld [vmem:[%s4049_s3 + $0x34] sm:$0xf]  ;;  %4068 = vst [vmem:[#allocation6_spill] sm:$0xff] %v3327_v39 }
 0x187   :  { %v716_v16 = vpack.c.bf16 %v652_v2, %v650_v60  ;;  %v632_v46 = vmax.f32 %v474_v6, 0.0  ;;  %v633_v60 = vmax.f32 %v563_v51, 0.0  ;;  %v186_v2 = vpop.permute.xlu0 %185  ;;  %v2338_v37 = vor.u32 %v2488_v61, %v2337_v43  ;;  %v2283_v50 = vld [vmem:[%s4049_s3 + $0x38] sm:$0xf0]  ;;  %v2377_v43 = vld [vmem:[%s4049_s3 + $0xf0] sm:$0xf] }
 0x188   :  { %v717_v3 = vpack.c.bf16 %v653_v12, %v651_v42  ;;  %1108 = vmatmul.bf16.gmra.mxu2 %v2306_v5  ;;  %v712_v32 = vpack.c.bf16 %v644_v48, %v642_v56  ;;  %v708_v42 = vpack.c.bf16 %v636_v29, %v634_v30  ;;  %v709_v12 = vpack.c.bf16 %v637_v35, %v635_v57  ;;  %v2469_v56 = vld [vmem:[%s4049_s3 + $0x14] sm:$0xf]  ;;  %v2353_v30 = vld [vmem:[%s4049_s3 + $0xc0] sm:$0xf]  ;;  %v2498_v61 = vld [vmem:[%s4049_s3 + $0xf4] sm:$0xf0] }
 0x189   :  { %1286 = vmatmul.bf16.gmra.mxu0 %v2306_v5  ;;  %1159 = vmatpush.bf16.msra.mxu3 %v716_v16  ;;  %v558_v5 = vadd.f32 %v3170_v24, %v201_v7  ;;  %v551_v22 = vadd.f32 %v3143_v26, %v186_v2  ;;  %v553_v24 = vadd.f32 %v3151_v33, %v191_v20  ;;  %v2484_v33 = vld [vmem:[%s4049_s3 + $0x84] sm:$0xf0]  ;;  %v2471_v7 = vld [vmem:[%s4049_s3 + $0x24] sm:$0xf] }
 0x18a   :  { %1337 = vmatpush.bf16.msrb.mxu1 %v717_v3  ;;  %v706_v16 = vpack.c.bf16 %v632_v46, %v630_v21  ;;  %v707_v3 = vpack.c.bf16 %v633_v60, %v631_v49  ;;  %v462_v11 = vadd.f32 %v3141_v14, %v186_v2  ;;  %v2467_v14 = vld [vmem:[%s4049_s3 + $0x4] sm:$0xf]  ;;  %v2322_v15 = vor.u32 %v2484_v33, %v2321_v31  ;;  %v3355_v49 = vpop.permute.xlu2 %822  ;;  %v2307_v33 = vld [vmem:[%s4049_s3 + $0x68] sm:$0xf0] }
 0x18b   :  { %v629_v19 = vmax.f32 %v558_v5, 0.0  ;;  %v623_v62 = vmax.f32 %v551_v22, 0.0  ;;  %v625_v17 = vmax.f32 %v553_v24, 0.0  ;;  %v2270_v41 = vor.u32 %v2469_v56, %v2267_v53  ;;  %v2291_v5 = vld [vmem:[%s4049_s3 + $0x48] sm:$0xf0] }
 0x18c   :  { %v622_v26 = vmax.f32 %v462_v11, 0.0  ;;  %v2346_v29 = vor.u32 %v2490_v9, %v2345_v18  ;;  %v2286_v35 = vor.u32 %v2473_v0, %v2283_v50  ;;  %v2354_v46 = vor.u32 %v2492_v44, %v2353_v30  ;;  %v2479_v31 = vld [vmem:[%s4049_s3 + $0x64] sm:$0xf]  ;;  %v2323_v44 = vld [vmem:[%s4049_s3 + $0x88] sm:$0xf0] }
 0x18d   :  { %1160 = vmatpush.bf16.msra.mxu3 %v714_v36  ;;  %v705_v54 = vpack.c.bf16 %v629_v19, %v627_v23  ;;  %v703_v48 = vpack.c.bf16 %v625_v17, %v623_v62  ;;  %v2262_v36 = vor.u32 %v2467_v14, %v2259_v13  ;;  %v2294_v60 = vor.u32 %v2475_v28, %v2291_v5  ;;  %v2494_v23 = vld [vmem:[%s4049_s3 + $0xd4] sm:$0xf0]  ;;  %v2299_v19 = vld [vmem:[%s4049_s3 + $0x58] sm:$0xf0]  ;;  %v2483_v30 = vld [vmem:[%s4049_s3 + $0x84] sm:$0xf] }
 0x18e   :  { %1338 = vmatpush.bf16.msrb.mxu1 %v715_v47  ;;  %v702_v10 = vpack.c.bf16 %v624_v34, %v622_v26  ;;  %v2329_v47 = vld [vmem:[%s4049_s3 + $0x90] sm:$0xf]  ;;  %v2302_v11 = vor.u32 %v2477_v38, %v2299_v19  ;;  %v2496_v26 = vld [vmem:[%s4049_s3 + $0xe4] sm:$0xf0] }
 0x18f   :  { %v2330_v25 = vor.u32 %v2486_v52, %v2329_v47 }
 0x191   :  { %1161 = vmatpush.bf16.msra.mxu3 %v712_v32  ;;  %v2278_v32 = vor.u32 %v2471_v7, %v2275_v55  ;;  %v2481_v7 = vld [vmem:[%s4049_s3 + $0x74] sm:$0xf]  ;;  %v2315_v55 = vld [vmem:[%s4049_s3 + $0x78] sm:$0xf0] }
 0x192   :  { %1339 = vmatpush.bf16.msrb.mxu1 %v713_v8  ;;  %v3313_v8 = vpop.permute.xlu0 %827  ;;  %v3365_v59 = vpop.permute.xlu2 %907 }
 0x193   :  { %4071 = vst [vmem:[#allocation9_spill] sm:$0xff] %v3365_v59 }
 0x195   :  { %1162 = vmatpush.bf16.msra.mxu3 %v710_v45  ;;  %v3335_v45 = vpop.permute.xlu1 %817 }
 0x196   :  { %1340 = vmatpush.bf16.msrb.mxu1 %v711_v1 }
 0x198   :  { %1113 = vmatmul.bf16.gmra.mxu2 %v2314_v63 }
 0x199   :  { %1291 = vmatmul.bf16.gmra.mxu0 %v2314_v63  ;;  %1163 = vmatpush.bf16.msra.mxu3 %v708_v42 }
 0x19a   :  { %1341 = vmatpush.bf16.msrb.mxu1 %v709_v12  ;;  %v3333_v57 = vpop.permute.xlu0 %812  ;;  %v3387_v27 = vpop.permute.xlu2 %892 }
 0x19b   :  { %4073 = vst [vmem:[#allocation11_spill] sm:$0xff] %v3387_v27 }
 0x19d   :  { %1164 = vmatpush.bf16.msra.mxu3 %v706_v16  ;;  %v3357_v42 = vpop.permute.xlu1 %802 }
 0x19e   :  { %1342 = vmatpush.bf16.msrb.mxu1 %v707_v3  ;;  %v2362_v3 = vor.u32 %v2494_v23, %v2361_v58 }
 0x1a1   :  { %1165 = vmatpush.bf16.msra.mxu3 %v704_v40 }
 0x1a2   :  { %1343 = vmatpush.bf16.msrb.mxu1 %v705_v54  ;;  %v3341_v4 = vpop.permute.xlu0 %897  ;;  %v2369_v54 = vld [vmem:[%s4049_s3 + $0xe0] sm:$0xf]  ;;  %v3409_v14 = vpop.permute.xlu2 %807 }
 0x1a3   :  { %4069 = vst [vmem:[#allocation7_spill] sm:$0xff] %v3341_v4 }
 0x1a5   :  { %1166 = vmatpush.bf16.msra.mxu3 %v702_v10  ;;  %v3367_v21 = vpop.permute.xlu1 %887 }
 0x1a6   :  { %1344 = vmatpush.bf16.msrb.mxu1 %v703_v48  ;;  %v3331_v51 = vpop.f32.mrf.mxu0  ;;  %4072 = vst [vmem:[#allocation10_spill] sm:$0xff] %v3367_v21  ;;  %v2370_v48 = vor.u32 %v2496_v26, %v2369_v54 }
 0x1a8   :  { %1118 = vmatmul.bf16.gmra.mxu2 %v2322_v15  ;;  %1167 = vmatmul.bf16.vlgmr.msra.gmra.mxu3 %v2262_v36 }
 0x1a9   :  { %1296 = vmatmul.bf16.gmra.mxu0 %v2322_v15  ;;  %1345 = vmatmul.bf16.vlgmr.msrb.gmra.mxu1 %v2262_v36  ;;  %v2310_v15 = vor.u32 %v2479_v31, %v2307_v33 }
 0x1aa   :  { %v3363_v20 = vpop.permute.xlu0 %882  ;;  %v3419_v52 = vpop.permute.xlu2 %792 }
 0x1ab   :  { %v3329_v6 = vpop.f32.mrf.mxu2  ;;  %4070 = vst [vmem:[#allocation8_spill] sm:$0xff] %v3363_v20 }
 0x1ad   :  { %v3389_v62 = vpop.permute.xlu1 %872 }
 0x1ae   :  { %v3339_v63 = vpop.f32.mrf.mxu0  ;;  %4074 = vst [vmem:[#allocation12_spill] sm:$0xff] %v3389_v62 }
 0x1b2   :  { %v3385_v16 = vpop.permute.xlu0 %797  ;;  %v3441_v18 = vpop.permute.xlu2 %877 }
 0x1b3   :  { %v3337_v1 = vpop.f32.mrf.mxu2  ;;  %4075 = vst [vmem:[#allocation13_spill] sm:$0xff] %v3441_v18 }
 0x1b5   :  { %v3411_v13 = vpop.permute.xlu1 %787 }
 0x1b6   :  { %v3361_v2 = vpop.f32.mrf.mxu0 }
 0x1b8   :  { %1123 = vmatmul.bf16.gmra.mxu2 %v2330_v25  ;;  %1172 = vmatmul.bf16.gmra.mxu3 %v2270_v41 }
 0x1b9   :  { %1301 = vmatmul.bf16.gmra.mxu0 %v2330_v25  ;;  %1350 = vmatmul.bf16.gmra.mxu1 %v2270_v41 }
 0x1ba   :  { %v3395_v40 = vpop.permute.xlu0 %782 }
 0x1bb   :  { %v3359_v12 = vpop.f32.mrf.mxu2 }
 0x1bd   :  { %v3421_v56 = vpop.permute.xlu1 %772 }
 0x1be   :  { %v3374_v24 = vpop.f32.mrf.mxu0 }
 0x1c2   :  { %v3417_v47 = vpop.permute.xlu0 %867 }
 0x1c3   :  { %v3369_v22 = vpop.f32.mrf.mxu2 }
 0x1c5   :  { %v3443_v9 = vpop.permute.xlu1 %857 }
 0x1c6   :  { %v3393_v17 = vpop.f32.mrf.mxu0 }
 0x1c8   :  { %1128 = vmatmul.bf16.gmra.mxu2 %v2338_v37  ;;  %1177 = vmatmul.bf16.gmra.mxu3 %v2278_v32 }
 0x1c9   :  { %1306 = vmatmul.bf16.gmra.mxu0 %v2338_v37  ;;  %1355 = vmatmul.bf16.gmra.mxu1 %v2278_v32  ;;  %v2378_v37 = vor.u32 %v2498_v61, %v2377_v43  ;;  %v2318_v32 = vor.u32 %v2481_v7, %v2315_v55  ;;  %v2331_v43 = vld [vmem:[%s4049_s3 + $0x98] sm:$0xf0] }
 0x1ca   :  { %v3427_v41 = vpop.permute.xlu0 %852 }
 0x1cb   :  { %v3391_v34 = vpop.f32.mrf.mxu2 }
 0x1cd   :  { %v3457_v28 = vpop.permute.xlu1 %842 }
 0x1ce   :  { %v3415_v36 = vpop.f32.mrf.mxu0 }
 0x1d3   :  { %v3413_v10 = vpop.f32.mrf.mxu2 }
 0x1d6   :  { %v3425_v25 = vpop.f32.mrf.mxu0 }
 0x1d8   :  { %1133 = vmatmul.bf16.gmra.mxu2 %v2346_v29  ;;  %1182 = vmatmul.bf16.gmra.mxu3 %v2286_v35 }
 0x1d9   :  { %1311 = vmatmul.bf16.gmra.mxu0 %v2346_v29  ;;  %1360 = vmatmul.bf16.gmra.mxu1 %v2286_v35  ;;  %v768_v29 = vpop.permute.xlu0 %767  ;;  %v3449_v35 = vpop.permute.xlu2 %862 }
 0x1db   :  { %v3423_v53 = vpop.f32.mrf.mxu2 }
 0x1de   :  { %v3447_v50 = vpop.f32.mrf.mxu0 }
 0x1e1   :  { %v753_v5 = vpop.permute.xlu0 %752  ;;  %v3460_v38 = vpop.permute.xlu2 %777 }
 0x1e2   :  { %v1080_v19 = vadd.f32 %v3329_v6, %v753_v5 }
 0x1e3   :  { %v3445_v0 = vpop.f32.mrf.mxu2 }
 0x1e8   :  { %1138 = vmatmul.bf16.gmra.mxu2 %v2354_v46  ;;  %1187 = vmatmul.bf16.gmra.mxu3 %v2294_v60 }
 0x1e9   :  { %1316 = vmatmul.bf16.gmra.mxu0 %v2354_v46  ;;  %1365 = vmatmul.bf16.gmra.mxu1 %v2294_v60  ;;  %v2326_v46 = vor.u32 %v2483_v30, %v2323_v44  ;;  %v1258_v60 = vadd.f32 %v3331_v51, %v753_v5  ;;  %v2485_v51 = vld [vmem:[%s4049_s3 + $0x94] sm:$0xf]  ;;  %v763_v55 = vpop.permute.xlu2 %762 }
 0x1f8   :  { %1143 = vmatmul.bf16.gmra.mxu2 %v2362_v3  ;;  %1192 = vmatmul.bf16.gmra.mxu3 %v2302_v11 }
 0x1f9   :  { %1321 = vmatmul.bf16.gmra.mxu0 %v2362_v3  ;;  %1370 = vmatmul.bf16.gmra.mxu1 %v2302_v11  ;;  %v758_v11 = vpop.permute.xlu1 %757 }
 0x1fa   :  { %v1260_v26 = vadd.f32 %v3339_v63, %v758_v11  ;;  %v1082_v61 = vadd.f32 %v3337_v1, %v758_v11  ;;  %v2334_v63 = vor.u32 %v2485_v51, %v2331_v43  ;;  %v1085_v1 = vadd.f32 %v3359_v12, %v763_v55 }
 0x208   :  { %1148 = vmatmul.bf16.gmra.mxu2 %v2370_v48  ;;  %1197 = vmatmul.bf16.gmra.mxu3 %v2310_v15 }
 0x209   :  { %1326 = vmatmul.bf16.gmra.mxu0 %v2370_v48  ;;  %1375 = vmatmul.bf16.gmra.mxu1 %v2310_v15 }
 0x218   :  { %1153 = vmatmul.bf16.gmra.mxu2 %v2378_v37  ;;  %1202 = vmatmul.bf16.gmra.mxu3 %v2318_v32 }
 0x219   :  { %1331 = vmatmul.bf16.gmra.mxu0 %v2378_v37  ;;  %1380 = vmatmul.bf16.gmra.mxu1 %v2318_v32  ;;  %v1263_v32 = vadd.f32 %v3361_v2, %v763_v55 }
 0x226   :  { %v1346_v58 = vpop.f32.mrf.mxu1 }
 0x227   :  { %v1347_v23 = vadd.f32 %v1346_v58, %v1258_v60  ;;  %v3476_v58 = vpop.f32.mrf.mxu2 }
 0x228   :  { %1207 = vmatmul.bf16.gmra.mxu3 %v2326_v46 }
 0x229   :  { %1385 = vmatmul.bf16.gmra.mxu1 %v2326_v46  ;;  %v1427_v48 = vmax.f32 %v1347_v23, 0.0 }
 0x22b   :  { %v1168_v3 = vpop.f32.mrf.mxu3 }
 0x22c   :  { %v1169_v54 = vadd.f32 %v1168_v3, %v1080_v19  ;;  %v1265_v3 = vadd.f32 %v3374_v24, %v768_v29 }
 0x22e   :  { %v1348_v31 = vpop.f32.mrf.mxu1  ;;  %v1426_v30 = vmax.f32 %v1169_v54, 0.0  ;;  %v2487_v54 = vld [vmem:[%s4049_s3 + $0xa4] sm:$0xf] }
 0x22f   :  { %v1349_v33 = vadd.f32 %v1348_v31, %v1260_v26  ;;  %v3487_v12 = vpop.f32.mrf.mxu2 }
 0x231   :  { %v1429_v15 = vmax.f32 %v1349_v33, 0.0  ;;  %v2339_v33 = vld [vmem:[%s4049_s3 + $0xa8] sm:$0xf0] }
 0x233   :  { %v1170_v6 = vpop.f32.mrf.mxu3  ;;  %v3471_v7 = vpack.c.bf16 %v1429_v15, %v1427_v48  ;;  %v1087_v48 = vadd.f32 %v3369_v22, %v768_v29  ;;  %v1277_v15 = vpop.f32.mrf.mxu0  ;;  %v1090_v22 = vadd.f32 %v3391_v34, %v3421_v56  ;;  %v2347_v34 = vld [vmem:[%s4049_s3 + $0xb8] sm:$0xf0] }
 0x234   :  { %v1171_v37 = vadd.f32 %v1170_v6, %v1082_v61  ;;  %v2342_v61 = vor.u32 %v2487_v54, %v2339_v33  ;;  %v1268_v6 = vadd.f32 %v3393_v17, %v3421_v56  ;;  %v1092_v56 = vadd.f32 %v3413_v10, %v3460_v38 }
 0x235   :  { %4076 = vst [vmem:[#allocation14_spill] sm:$0xff] %v3471_v7  ;;  %v1273_v54 = vadd.f32 %v3425_v25, %v3395_v40  ;;  %v1095_v10 = vadd.f32 %v3423_v53, %v3395_v40  ;;  %v1275_v25 = vadd.f32 %v3447_v50, %v3411_v13  ;;  %v2355_v40 = vld [vmem:[%s4049_s3 + $0xc8] sm:$0xf0]  ;;  %v1097_v53 = vadd.f32 %v3445_v0, %v3411_v13 }
 0x236   :  { %v1428_v44 = vmax.f32 %v1171_v37, 0.0  ;;  %v1351_v5 = vpop.f32.mrf.mxu1 }
 0x237   :  { %v1352_v46 = vadd.f32 %v1351_v5, %v1263_v32 }
 0x238   :  { %1212 = vmatmul.bf16.gmra.mxu3 %v2334_v63  ;;  %v3474_v60 = vpack.c.bf16 %v1428_v44, %v1426_v30 }
 0x239   :  { %1390 = vmatmul.bf16.gmra.mxu1 %v2334_v63  ;;  %v1431_v31 = vmax.f32 %v1352_v46, 0.0  ;;  %v1270_v46 = vadd.f32 %v3415_v36, %v3460_v38 }
 0x23b   :  { %v1173_v23 = vpop.f32.mrf.mxu3  ;;  %v3497_v44 = vpop.f32.mrf.mxu0 }
 0x23c   :  { %v1174_v19 = vadd.f32 %v1173_v23, %v1085_v1  ;;  %v3501_v1 = vpop.f32.mrf.mxu2 }
 0x23e   :  { %v1353_v11 = vpop.f32.mrf.mxu1  ;;  %v1430_v55 = vmax.f32 %v1174_v19, 0.0 }
 0x23f   :  { %v1354_v26 = vadd.f32 %v1353_v11, %v1265_v3  ;;  %v2489_v11 = vld [vmem:[%s4049_s3 + $0xb4] sm:$0xf] }
 0x241   :  { %v1433_v2 = vmax.f32 %v1354_v26, 0.0 }
 0x243   :  { %v1175_v51 = vpop.f32.mrf.mxu3  ;;  %v3489_v43 = vpack.c.bf16 %v1433_v2, %v1431_v31  ;;  %v2350_v2 = vor.u32 %v2489_v11, %v2347_v34  ;;  %v3515_v33 = vpop.f32.mrf.mxu0  ;;  %v1278_v11 = vadd.f32 %v1277_v15, %v3419_v52  ;;  %v2493_v15 = vld [vmem:[%s4049_s3 + $0xd4] sm:$0xf] }
 0x244   :  { %v1176_v24 = vadd.f32 %v1175_v51, %v1087_v48 }
 0x245   :  { %4077 = vst [vmem:[#allocation15_spill] sm:$0xff] %v3489_v43 }
 0x246   :  { %v1432_v37 = vmax.f32 %v1176_v24, 0.0  ;;  %v1356_v63 = vpop.f32.mrf.mxu1 }
 0x247   :  { %v1357_v32 = vadd.f32 %v1356_v63, %v1268_v6 }
 0x248   :  { %1217 = vmatmul.bf16.gmra.mxu3 %v2342_v61  ;;  %v3493_v30 = vpack.c.bf16 %v1432_v37, %v1430_v55 }
 0x249   :  { %1395 = vmatmul.bf16.gmra.mxu1 %v2342_v61  ;;  %v1435_v19 = vmax.f32 %v1357_v32, 0.0  ;;  %v3517_v61 = vpop.f32.mrf.mxu2 }
 0x24a   :  { %v1107_v4 = vadd.f32 %v3517_v61, %v3409_v14 }
 0x24b   :  { %v1178_v29 = vpop.f32.mrf.mxu3 }
 0x24c   :  { %v1179_v5 = vadd.f32 %v1178_v29, %v1090_v22  ;;  %v3525_v22 = vpop.f32.mrf.mxu0 }
 0x24e   :  { %v1358_v17 = vpop.f32.mrf.mxu1  ;;  %v1434_v48 = vmax.f32 %v1179_v5, 0.0 }
 0x24f   :  { %v1359_v23 = vadd.f32 %v1358_v17, %v1270_v46  ;;  %v2491_v17 = vld [vmem:[%s4049_s3 + $0xc4] sm:$0xf] }
 0x251   :  { %v1437_v3 = vmax.f32 %v1359_v23, 0.0  ;;  %v3527_v29 = vpop.f32.mrf.mxu2 }
 0x253   :  { %v1180_v26 = vpop.f32.mrf.mxu3  ;;  %v3511_v31 = vpack.c.bf16 %v1437_v3, %v1435_v19  ;;  %v2358_v3 = vor.u32 %v2491_v17, %v2355_v40  ;;  %v2371_v17 = vld [vmem:[%s4049_s3 + $0xe8] sm:$0xf0] }
 0x254   :  { %v1181_v36 = vadd.f32 %v1180_v26, %v1092_v56  ;;  %v1287_v13 = vpop.f32.mrf.mxu0 }
 0x256   :  { %v1436_v51 = vmax.f32 %v1181_v36, 0.0  ;;  %v1361_v24 = vpop.f32.mrf.mxu1 }
 0x257   :  { %v1362_v6 = vadd.f32 %v1361_v24, %v1273_v54  ;;  %v1100_v54 = vadd.f32 %v3476_v58, %v3419_v52 }
 0x258   :  { %1222 = vmatmul.bf16.gmra.mxu3 %v2350_v2  ;;  %v3519_v55 = vpack.c.bf16 %v1436_v51, %v1434_v48 }
 0x259   :  { %1400 = vmatmul.bf16.gmra.mxu1 %v2350_v2  ;;  %v1439_v5 = vmax.f32 %v1362_v6, 0.0  ;;  %v1111_v0 = vpop.f32.mrf.mxu2  ;;  %v2363_v6 = vld [vmem:[%s4049_s3 + $0xd8] sm:$0xf0] }
 0x25a   :  { %v1112_v21 = vadd.f32 %v1111_v0, %v3335_v45 }
 0x25b   :  { %v1183_v38 = vpop.f32.mrf.mxu3 }
 0x25c   :  { %v1184_v37 = vadd.f32 %v1183_v38, %v1095_v10  ;;  %v1289_v38 = vpop.f32.mrf.mxu0 }
 0x25e   :  { %v1363_v63 = vpop.f32.mrf.mxu1  ;;  %v1438_v34 = vmax.f32 %v1184_v37, 0.0  ;;  %v2366_v37 = vor.u32 %v2493_v15, %v2363_v6 }
 0x25f   :  { %v1364_v32 = vadd.f32 %v1363_v63, %v1275_v25 }
 0x261   :  { %v1441_v46 = vmax.f32 %v1364_v32, 0.0  ;;  %v1114_v52 = vpop.f32.mrf.mxu2 }
 0x262   :  { %v1115_v20 = vadd.f32 %v1114_v52, %v3355_v49 }
 0x263   :  { %v1185_v50 = vpop.f32.mrf.mxu3  ;;  %v3537_v23 = vpack.c.bf16 %v1441_v46, %v1439_v5  ;;  %v2495_v46 = vld [vmem:[%s4049_s3 + $0xe4] sm:$0xf] }
 0x264   :  { %v1186_v19 = vadd.f32 %v1185_v50, %v1097_v53  ;;  %v3560_v63 = vpop.f32.mrf.mxu0  ;;  %v2374_v53 = vor.u32 %v2495_v46, %v2371_v17  ;;  %v2379_v46 = vld [vmem:[%s4049_s3 + $0xf8] sm:$0xf0] }
 0x266   :  { %v1440_v56 = vmax.f32 %v1186_v19, 0.0  ;;  %v1366_v26 = vpop.f32.mrf.mxu1 }
 0x267   :  { %v3540_v36 = vadd.f32 %v1366_v26, %v1278_v11  ;;  %v1288_v11 = vadd.f32 %v1287_v13, %v3333_v57 }
 0x268   :  { %1227 = vmatmul.bf16.gmra.mxu3 %v2358_v3  ;;  %v3542_v2 = vpack.c.bf16 %v1440_v56, %v1438_v34  ;;  %v1290_v56 = vadd.f32 %v1289_v38, %v3335_v45 }
 0x269   :  { %1405 = vmatmul.bf16.gmra.mxu1 %v2358_v3  ;;  %v1116_v5 = vpop.f32.mrf.mxu2 }
 0x26b   :  { %v1188_v48 = vpop.f32.mrf.mxu3 }
 0x26c   :  { %v3546_v51 = vadd.f32 %v1188_v48, %v1100_v54  ;;  %v3570_v19 = vpop.f32.mrf.mxu0 }
 0x26e   :  { %v3548_v24 = vpop.f32.mrf.mxu1 }
 0x271   :  { %v1119_v3 = vpop.f32.mrf.mxu2 }
 0x273   :  { %v3556_v10 = vpop.f32.mrf.mxu3 }
 0x274   :  { %v1297_v17 = vpop.f32.mrf.mxu0 }
 0x276   :  { %v3558_v58 = vpop.f32.mrf.mxu1 }
 0x278   :  { %1232 = vmatmul.bf16.gmra.mxu3 %v2366_v37 }
 0x279   :  { %1410 = vmatmul.bf16.gmra.mxu1 %v2366_v37  ;;  %v2497_v37 = vld [vmem:[%s4049_s3 + $0xf4] sm:$0xf] }
 0x27a   :  { %v2382_v38 = vor.u32 %v2497_v37, %v2379_v46  ;;  %v1110_v46 = vadd.f32 %v3527_v29, %v3333_v57 }
 0x27b   :  { %v1193_v25 = vpop.f32.mrf.mxu3 }
 0x27e   :  { %v3562_v32 = vpop.f32.mrf.mxu1 }
 0x283   :  { %v1195_v40 = vpop.f32.mrf.mxu3 }
 0x286   :  { %v1376_v50 = vpop.f32.mrf.mxu1 }
 0x287   :  { %v1377_v26 = vadd.f32 %v1376_v50, %v1288_v11  ;;  %v3586_v11 = vpop.permute.xlu2 %847 }
 0x288   :  { %1237 = vmatmul.bf16.gmra.mxu3 %v2374_v53 }
 0x289   :  { %1415 = vmatmul.bf16.gmra.mxu1 %v2374_v53  ;;  %v1451_v15 = vmax.f32 %v1377_v26, 0.0  ;;  %v3580_v53 = vpop.f32.mrf.mxu2  ;;  %v1299_v26 = vpop.f32.mrf.mxu0 }
 0x28a   :  { %4078 = vst [vmem:[#allocation16_spill] sm:$0xff] %v3580_v53 }
 0x28b   :  { %v1198_v34 = vpop.f32.mrf.mxu3 }
 0x28c   :  { %v1199_v62 = vadd.f32 %v1198_v34, %v1110_v46 }
 0x28e   :  { %v1378_v54 = vpop.f32.mrf.mxu1  ;;  %v1450_v61 = vmax.f32 %v1199_v62, 0.0 }
 0x28f   :  { %v1379_v48 = vadd.f32 %v1378_v54, %v1290_v56  ;;  %v833_v37 = vpop.permute.xlu2 %832 }
 0x290   :  { %v1298_v59 = vadd.f32 %v1297_v17, %v833_v37  ;;  %v3603_v17 = vpop.permute.xlu0 %837 }
 0x291   :  { %v1453_v6 = vmax.f32 %v1379_v48, 0.0  ;;  %v1124_v54 = vpop.f32.mrf.mxu2  ;;  %v1302_v39 = vpop.f32.mrf.mxu0 }
 0x293   :  { %v3582_v13 = vpack.c.bf16 %v1453_v6, %v1451_v15  ;;  %v1200_v18 = vpop.f32.mrf.mxu3  ;;  %v1117_v15 = vadd.f32 %v1116_v5, %v3313_v8  ;;  %v1196_v5 = vadd.f32 %v1195_v40, %v1107_v4  ;;  %v1300_v4 = vadd.f32 %v1299_v26, %v3603_v17 }
 0x294   :  { %v1303_v26 = vadd.f32 %v1302_v39, %v3457_v28 }
 0x296   :  { %v3584_v50 = vpop.f32.mrf.mxu1 }
 0x298   :  { %1242 = vmatmul.bf16.gmra.mxu3 %v2382_v38 }
 0x299   :  { %1420 = vmatmul.bf16.gmra.mxu1 %v2382_v38  ;;  %v1201_v38 = vadd.f32 %v1200_v18, %v1112_v21  ;;  %v3597_v45 = vpop.f32.mrf.mxu2  ;;  %v1102_v21 = vadd.f32 %v3487_v12, %v3385_v16  ;;  %v1120_v18 = vadd.f32 %v1119_v3, %v833_v37  ;;  %v1304_v12 = vpop.f32.mrf.mxu0  ;;  %v1442_v37 = vmax.f32 %v3546_v51, 0.0 }
 0x29a   :  { %v1305_v39 = vadd.f32 %v1304_v12, %v3586_v11 }
 0x29b   :  { %v1203_v56 = vpop.f32.mrf.mxu3 }
 0x29c   :  { %v1204_v6 = vadd.f32 %v1203_v56, %v1115_v20  ;;  %v1105_v20 = vadd.f32 %v3501_v1, %v3357_v42  ;;  %v1452_v56 = vmax.f32 %v1201_v38, 0.0 }
 0x29e   :  { %v3588_v48 = vpop.f32.mrf.mxu1  ;;  %v1454_v7 = vmax.f32 %v1204_v6, 0.0  ;;  %v1194_v29 = vadd.f32 %v1193_v25, %v1105_v20 }
 0x2a0   :  { %v1446_v1 = vmax.f32 %v1194_v29, 0.0 }
 0x2a1   :  { %v1129_v62 = vpop.f32.mrf.mxu2 }
 0x2a3   :  { %v1205_v53 = vpop.f32.mrf.mxu3 }
 0x2a4   :  { %v1206_v27 = vadd.f32 %v1205_v53, %v1117_v15  ;;  %v1448_v53 = vmax.f32 %v1196_v5, 0.0  ;;  %v1125_v5 = vadd.f32 %v1124_v54, %v3457_v28 }
 0x2a6   :  { %v1456_v52 = vmax.f32 %v1206_v27, 0.0  ;;  %v1386_v43 = vpop.f32.mrf.mxu1  ;;  %v1191_v27 = vadd.f32 %v3556_v10, %v1102_v21  ;;  %v1516_v25 = vpack.c.bf16 %v1448_v53, %v1446_v1 }
 0x2a7   :  { %v1387_v0 = vadd.f32 %v1386_v43, %v1298_v59  ;;  %v1518_v43 = vpack.c.bf16 %v1452_v56, %v1450_v61  ;;  %v1307_v56 = vpop.f32.mrf.mxu0 }
 0x2a8   :  { %v1520_v57 = vpack.c.bf16 %v1456_v52, %v1454_v7  ;;  %v1444_v3 = vmax.f32 %v1191_v27, 0.0  ;;  %v1283_v27 = vadd.f32 %v3515_v33, %v3357_v42  ;;  %v1308_v53 = vadd.f32 %v1307_v56, %v3427_v41 }
 0x2a9   :  { %v1459_v15 = vmax.f32 %v1387_v0, 0.0  ;;  %v1295_v0 = vadd.f32 %v3570_v19, %v3313_v8  ;;  %v3619_v51 = vpop.f32.mrf.mxu2 }
 0x2aa   :  { %1714 = vmatpush.bf16.msrb.mxu2 %v1520_v57  ;;  %v1514_v38 = vpack.c.bf16 %v1444_v3, %v1442_v37 }
 0x2ab   :  { %v1208_v34 = vpop.f32.mrf.mxu3  ;;  %v1384_v29 = vadd.f32 %v3588_v48, %v1295_v0 }
 0x2ac   :  { %v3606_v59 = vadd.f32 %v1208_v34, %v1120_v18  ;;  %v1293_v18 = vadd.f32 %v3560_v63, %v3355_v49  ;;  %v2385_v34 = vld [vmem:[%s4051_s5] sm:$0xf]  ;;  %v2500_v49 = vld [vmem:[%s4051_s5 + $0x4] sm:$0xf0]  ;;  %v1285_v63 = vadd.f32 %v3525_v22, %v3409_v14  ;;  %v1280_v14 = vadd.f32 %v3497_v44, %v3385_v16 }
 0x2ad   :  { %v1457_v54 = vmax.f32 %v1384_v29, 0.0  ;;  %v1372_v22 = vadd.f32 %v3558_v58, %v1283_v27 }
 0x2ae   :  { %v1388_v7 = vpop.f32.mrf.mxu1  ;;  %1715 = vmatpush.bf16.msrb.mxu2 %v1518_v43  ;;  %v1382_v28 = vadd.f32 %v3584_v50, %v1293_v18  ;;  %v1369_v42 = vadd.f32 %v3548_v24, %v1280_v14  ;;  %v1443_v24 = vmax.f32 %v3540_v36, 0.0 }
 0x2af   :  { %v1389_v40 = vadd.f32 %v1388_v7, %v1300_v4  ;;  %v1374_v4 = vadd.f32 %v3562_v32, %v1285_v63  ;;  %v3646_v7 = vor.u32 %v2500_v49, %v2385_v34  ;;  %v1130_v32 = vadd.f32 %v1129_v62, %v3427_v41  ;;  %v2401_v63 = vld [vmem:[%s4051_s5 + $0x20] sm:$0xf] }
 0x2b0   :  { %v1447_v3 = vmax.f32 %v1372_v22, 0.0  ;;  %v1445_v16 = vmax.f32 %v1369_v42, 0.0 }
 0x2b1   :  { %v1461_v6 = vmax.f32 %v1389_v40, 0.0  ;;  %v1134_v43 = vpop.f32.mrf.mxu2  ;;  %v1449_v33 = vmax.f32 %v1374_v4, 0.0 }
 0x2b2   :  { %1716 = vmatpush.bf16.msrb.mxu2 %v1516_v25  ;;  %v1135_v29 = vadd.f32 %v1134_v43, %v3449_v35 }
 0x2b3   :  { %v3610_v10 = vpack.c.bf16 %v1461_v6, %v1459_v15  ;;  %v3612_v46 = vpop.f32.mrf.mxu3  ;;  %v1517_v44 = vpack.c.bf16 %v1449_v33, %v1447_v3  ;;  %v2409_v33 = vld [vmem:[%s4051_s5 + $0x30] sm:$0xf] }
 0x2b5   :  { %4079 = vst [vmem:[#allocation17_spill] sm:$0xff] %v3610_v10 }
 0x2b6   :  { %v1391_v52 = vpop.f32.mrf.mxu1  ;;  %1717 = vmatpush.bf16.msrb.mxu2 %v1514_v38 }
 0x2b7   :  { %v1392_v20 = vadd.f32 %v1391_v52, %v1303_v26  ;;  %v1515_v26 = vpack.c.bf16 %v1445_v16, %v1443_v24  ;;  %v2502_v52 = vld [vmem:[%s4051_s5 + $0x14] sm:$0xf0]  ;;  %v2417_v24 = vld [vmem:[%s4051_s5 + $0x40] sm:$0xf] }
 0x2b9   :  { %v1463_v8 = vmax.f32 %v1392_v20, 0.0  ;;  %v3659_v37 = vpop.f32.mrf.mxu2 }
 0x2ba   :  { %1718 = vmatpush.bf16.msrb.mxu2 %v3542_v2 }
 0x2bb   :  { %v1213_v57 = vpop.f32.mrf.mxu3 }
 0x2bc   :  { %v3621_v21 = vadd.f32 %v1213_v57, %v1125_v5 }
 0x2be   :  { %v1393_v61 = vpop.f32.mrf.mxu1  ;;  %1719 = vmatpush.bf16.msrb.mxu2 %v3519_v55  ;;  %v1455_v55 = vmax.f32 %v1382_v28, 0.0 }
 0x2bf   :  { %v1394_v2 = vadd.f32 %v1393_v61, %v1305_v39 }
 0x2c0   :  { %v1521_v1 = vpack.c.bf16 %v1457_v54, %v1455_v55 }
 0x2c1   :  { %v1465_v19 = vmax.f32 %v1394_v2, 0.0  ;;  %v1139_v39 = vpop.f32.mrf.mxu2 }
 0x2c2   :  { %1720 = vmatpush.bf16.msrb.mxu2 %v3493_v30  ;;  %v1309_v30 = vpop.f32.mrf.mxu0 }
 0x2c3   :  { %v3638_v48 = vpack.c.bf16 %v1465_v19, %v1463_v8  ;;  %v3640_v50 = vpop.f32.mrf.mxu3  ;;  %v4082_v19 = vld [vmem:[#allocation15_spill] sm:$0xff] }
 0x2c5   :  { %4080 = vst [vmem:[#allocation18_spill] sm:$0xff] %v3638_v48 }
 0x2c6   :  { %v1396_v40 = vpop.f32.mrf.mxu1  ;;  %1721 = vmatpush.bf16.msrb.mxu2 %v3474_v60  ;;  %v1310_v60 = vadd.f32 %v1309_v30, %v3443_v9  ;;  %v4083_v30 = vld [vmem:[#allocation14_spill] sm:$0xff] }
 0x2c7   :  { %v1397_v12 = vadd.f32 %v1396_v40, %v1308_v53  ;;  %v4084_v53 = vld [vmem:[#allocation12_spill] sm:$0xff] }
 0x2c8   :  { %v1140_v14 = vadd.f32 %v1139_v39, %v4084_v53  ;;  %v2510_v39 = vld [vmem:[%s4051_s5 + $0x54] sm:$0xf0] }
 0x2c9   :  { %1722 = vmatmul.bf16.vlgmr.msrb.gmra.mxu2 %v3646_v7  ;;  %v1467_v41 = vmax.f32 %v1397_v12, 0.0 }
 0x2ca   :  { %1812 = vmatpush.bf16.msra.mxu2 %v1521_v1  ;;  %v1312_v58 = vpop.f32.mrf.mxu0 }
 0x2cb   :  { %v1218_v25 = vpop.f32.mrf.mxu3  ;;  %v1313_v36 = vadd.f32 %v1312_v58, %v3449_v35  ;;  %v2504_v35 = vld [vmem:[%s4051_s5 + $0x24] sm:$0xf0] }
 0x2cc   :  { %v3656_v15 = vadd.f32 %v1218_v25, %v1130_v32  ;;  %v3697_v4 = vor.u32 %v2504_v35, %v2401_v63  ;;  %v2506_v32 = vld [vmem:[%s4051_s5 + $0x34] sm:$0xf0]  ;;  %v4090_v63 = vld [vmem:[#allocation7_spill] sm:$0xff] }
 0x2cd   :  { %v3711_v25 = vor.u32 %v2506_v32, %v2409_v33  ;;  %v4092_v33 = vld [vmem:[#allocation11_spill] sm:$0xff] }
 0x2ce   :  { %1813 = vmatpush.bf16.msra.mxu2 %v3582_v13  ;;  %v1398_v6 = vpop.f32.mrf.mxu1  ;;  %v2393_v13 = vld [vmem:[%s4051_s5 + $0x10] sm:$0xf]  ;;  %4085 = vst [vmem:[#allocation15_spill] sm:$0xff] %v3697_v4 }
 0x2cf   :  { %v1399_v38 = vadd.f32 %v1398_v6, %v1310_v60  ;;  %v3673_v56 = vor.u32 %v2502_v52, %v2393_v13  ;;  %4086 = vst [vmem:[#allocation14_spill] sm:$0xff] %v3711_v25 }
 0x2d1   :  { %v1469_v62 = vmax.f32 %v1399_v38, 0.0  ;;  %v2508_v38 = vld [vmem:[%s4051_s5 + $0x44] sm:$0xf0] }
 0x2d2   :  { %1814 = vmatpush.bf16.msra.mxu2 %v1517_v44  ;;  %v1314_v18 = vpop.f32.mrf.mxu0 }
 0x2d3   :  { %v3668_v20 = vpack.c.bf16 %v1469_v62, %v1467_v41  ;;  %v3670_v5 = vpop.f32.mrf.mxu3  ;;  %v1315_v2 = vadd.f32 %v1314_v18, %v3417_v47  ;;  %v3724_v41 = vor.u32 %v2508_v38, %v2417_v24  ;;  %v2425_v18 = vld [vmem:[%s4051_s5 + $0x50] sm:$0xf] }
 0x2d5   :  { %4081 = vst [vmem:[#allocation19_spill] sm:$0xff] %v3668_v20  ;;  %v4095_v20 = vld [vmem:[#allocation13_spill] sm:$0xff] }
 0x2d6   :  { %1815 = vmatpush.bf16.msra.mxu2 %v1515_v26  ;;  %v1401_v0 = vpop.f32.mrf.mxu1  ;;  %4087 = vst [vmem:[#allocation12_spill] sm:$0xff] %v3724_v41 }
 0x2d7   :  { %v1402_v57 = vadd.f32 %v1401_v0, %v1313_v36 }
 0x2d9   :  { %1727 = vmatmul.bf16.gmra.mxu2 %v3673_v56  ;;  %v1471_v34 = vmax.f32 %v1402_v57, 0.0 }
 0x2da   :  { %1816 = vmatpush.bf16.msra.mxu2 %v3537_v23  ;;  %v1317_v23 = vpop.f32.mrf.mxu0 }
 0x2db   :  { %v1223_v61 = vpop.f32.mrf.mxu3  ;;  %v1318_v43 = vadd.f32 %v1317_v23, %v4084_v53 }
 0x2dc   :  { %v3679_v28 = vadd.f32 %v1223_v61, %v1135_v29 }
 0x2de   :  { %1817 = vmatpush.bf16.msra.mxu2 %v3511_v31  ;;  %v1403_v54 = vpop.f32.mrf.mxu1  ;;  %v3689_v31 = vpop.f32.mrf.mxu2 }
 0x2df   :  { %v1404_v8 = vadd.f32 %v1403_v54, %v1315_v2  ;;  %v3741_v2 = vor.u32 %v2510_v39, %v2425_v18 }
 0x2e1   :  { %v1473_v49 = vmax.f32 %v1404_v8, 0.0  ;;  %4088 = vst [vmem:[#allocation20_spill] sm:$0xff] %v3741_v2 }
 0x2e2   :  { %1818 = vmatpush.bf16.msra.mxu2 %v4082_v19  ;;  %v3714_v44 = vpop.f32.mrf.mxu0 }
 0x2e3   :  { %v3691_v55 = vpack.c.bf16 %v1473_v49, %v1471_v34  ;;  %v3693_v27 = vpop.f32.mrf.mxu3  ;;  %v4089_v49 = vld [vmem:[#allocation6_spill] sm:$0xff] }
 0x2e6   :  { %1819 = vmatpush.bf16.msra.mxu2 %v4083_v30  ;;  %v1406_v1 = vpop.f32.mrf.mxu1  ;;  %v1144_v42 = vpop.f32.mrf.mxu2  ;;  %v4091_v30 = vld [vmem:[#allocation9_spill] sm:$0xff] }
 0x2e7   :  { %v3699_v40 = vadd.f32 %v1406_v1, %v1318_v43  ;;  %v2433_v1 = vld [vmem:[%s4051_s5 + $0x60] sm:$0xf] }
 0x2e9   :  { %1732 = vmatmul.bf16.gmra.mxu2 %v3697_v4 }
 0x2ea   :  { %v3726_v62 = vpop.f32.mrf.mxu0 }
 0x2eb   :  { %v1228_v22 = vpop.f32.mrf.mxu3 }
 0x2ec   :  { %v3703_v12 = vadd.f32 %v1228_v22, %v1140_v14  ;;  %v2512_v14 = vld [vmem:[%s4051_s5 + $0x64] sm:$0xf0] }
 0x2ed   :  { %v3758_v39 = vor.u32 %v2512_v14, %v2433_v1 }
 0x2ee   :  { %v1146_v60 = vpop.f32.mrf.mxu2  ;;  %v3716_v58 = vpop.f32.mrf.mxu1 }
 0x2f2   :  { %v3731_v0 = vpop.f32.mrf.mxu0 }
 0x2f3   :  { %v1230_v3 = vpop.f32.mrf.mxu3 }
 0x2f6   :  { %v1149_v6 = vpop.f32.mrf.mxu2  ;;  %v3728_v13 = vpop.f32.mrf.mxu1 }
 0x2f7   :  { %v1150_v32 = vadd.f32 %v1149_v6, %v4092_v33  ;;  %v1142_v6 = vadd.f32 %v3689_v31, %v4095_v20  ;;  %v1132_v31 = vadd.f32 %v3619_v51, %v3443_v9  ;;  %v1127_v9 = vadd.f32 %v3597_v45, %v3586_v11 }
 0x2f8   :  { %v1470_v51 = vmax.f32 %v3679_v28, 0.0 }
 0x2f9   :  { %1737 = vmatmul.bf16.gmra.mxu2 %v3711_v25 }
 0x2fa   :  { %v3744_v54 = vpop.f32.mrf.mxu0 }
 0x2fb   :  { %v1233_v16 = vpop.f32.mrf.mxu3 }
 0x2fe   :  { %v1151_v52 = vpop.f32.mrf.mxu2  ;;  %v3733_v57 = vpop.f32.mrf.mxu1 }
 0x2ff   :  { %v1152_v35 = vadd.f32 %v1151_v52, %v4090_v63  ;;  %v4093_v52 = vld [vmem:[#allocation10_spill] sm:$0xff] }
 0x302   :  { %v1329_v24 = vpop.f32.mrf.mxu0 }
 0x303   :  { %v1235_v26 = vpop.f32.mrf.mxu3 }
 0x306   :  { %v1154_v61 = vpop.f32.mrf.mxu2  ;;  %v3746_v19 = vpop.f32.mrf.mxu1 }
 0x307   :  { %v1155_v23 = vadd.f32 %v1154_v61, %v4089_v49  ;;  %v1147_v61 = vadd.f32 %v1146_v60, %v4093_v52 }
 0x309   :  { %1742 = vmatmul.bf16.gmra.mxu2 %v3724_v41  ;;  %v4094_v41 = vld [vmem:[#allocation8_spill] sm:$0xff]  ;;  %v1236_v4 = vadd.f32 %v1235_v26, %v1147_v61 }
 0x30a   :  { %v1145_v25 = vadd.f32 %v1144_v42, %v4094_v41 }
 0x30b   :  { %v1238_v36 = vpop.f32.mrf.mxu3  ;;  %v1480_v1 = vmax.f32 %v1236_v4, 0.0 }
 0x30e   :  { %v1156_v34 = vpop.f32.mrf.mxu2 }
 0x30f   :  { %v1157_v53 = vadd.f32 %v1156_v34, %v4091_v30  ;;  %v1239_v34 = vadd.f32 %v1238_v36, %v1150_v32  ;;  %v1137_v36 = vadd.f32 %v3659_v37, %v3417_v47  ;;  %v2514_v47 = vld [vmem:[%s4051_s5 + $0x74] sm:$0xf0] }
 0x311   :  { %v1226_v42 = vadd.f32 %v3693_v27, %v1137_v36 }
 0x313   :  { %v1240_v29 = vpop.f32.mrf.mxu3  ;;  %v1472_v37 = vmax.f32 %v1226_v42, 0.0 }
 0x314   :  { %v1241_v38 = vadd.f32 %v1240_v29, %v1152_v35  ;;  %v1234_v29 = vadd.f32 %v1233_v16, %v1145_v25  ;;  %v1482_v35 = vmax.f32 %v1239_v34, 0.0  ;;  %v1474_v25 = vmax.f32 %v3703_v12, 0.0 }
 0x315   :  { %v1528_v32 = vpack.c.bf16 %v1472_v37, %v1470_v51  ;;  %v2507_v51 = vld [vmem:[%s4051_s5 + $0x44] sm:$0xf] }
 0x316   :  { %v1484_v10 = vmax.f32 %v1241_v38, 0.0  ;;  %v1478_v14 = vmax.f32 %v1234_v29, 0.0  ;;  %v4096_v38 = vld [vmem:[#allocation16_spill] sm:$0xff]  ;;  %v1330_v29 = vadd.f32 %v1329_v24, %v4090_v63  ;;  %v1325_v63 = vadd.f32 %v3731_v0, %v4093_v52 }
 0x318   :  { %v1534_v60 = vpack.c.bf16 %v1484_v10, %v1482_v35  ;;  %v2441_v10 = vld [vmem:[%s4051_s5 + $0x70] sm:$0xf] }
 0x319   :  { %1747 = vmatmul.bf16.gmra.mxu2 %v3741_v2  ;;  %v3778_v4 = vor.u32 %v2514_v47, %v2441_v10  ;;  %v2411_v47 = vld [vmem:[%s4051_s5 + $0x38] sm:$0xf0] }
 0x31b   :  { %v1243_v8 = vpop.f32.mrf.mxu3 }
 0x31c   :  { %v1244_v43 = vadd.f32 %v1243_v8, %v1155_v23  ;;  %v1418_v8 = vpop.f32.mrf.mxu1 }
 0x31e   :  { %v1486_v23 = vmax.f32 %v1244_v43, 0.0  ;;  %v1332_v43 = vpop.f32.mrf.mxu0 }
 0x323   :  { %v1245_v22 = vpop.f32.mrf.mxu3 }
 0x324   :  { %v1246_v18 = vadd.f32 %v1245_v22, %v1157_v53  ;;  %v1231_v53 = vadd.f32 %v1230_v3, %v1142_v6  ;;  %v1532_v22 = vpack.c.bf16 %v1480_v1, %v1478_v14  ;;  %v1216_v3 = vadd.f32 %v3640_v50, %v1127_v9 }
 0x325   :  { %v1462_v6 = vmax.f32 %v3621_v21, 0.0  ;;  %v1419_v1 = vadd.f32 %v1418_v8, %v1330_v29  ;;  %v2387_v21 = vld [vmem:[%s4051_s5 + $0x8] sm:$0xf0]  ;;  %v1320_v14 = vadd.f32 %v3714_v44, %v4095_v20  ;;  %v2501_v44 = vld [vmem:[%s4051_s5 + $0x14] sm:$0xf]  ;;  %v3883_v29 = vpop.permute.xlu2 %1561 }
 0x326   :  { %v1488_v2 = vmax.f32 %v1246_v18, 0.0  ;;  %v1476_v26 = vmax.f32 %v1231_v53, 0.0  ;;  %v1334_v12 = vpop.f32.mrf.mxu0  ;;  %v1466_v18 = vmax.f32 %v3656_v15, 0.0  ;;  %v1464_v45 = vmax.f32 %v1216_v3, 0.0 }
 0x327   :  { %v1335_v34 = vadd.f32 %v1334_v12, %v4091_v30  ;;  %v1328_v15 = vadd.f32 %v3744_v54, %v4092_v33  ;;  %v1323_v54 = vadd.f32 %v3726_v62, %v4094_v41  ;;  %v1485_v8 = vmax.f32 %v1419_v1, 0.0  ;;  %v2419_v12 = vld [vmem:[%s4051_s5 + $0x48] sm:$0xf0] }
 0x328   :  { %v1536_v48 = vpack.c.bf16 %v1488_v2, %v1486_v23  ;;  %v1421_v2 = vpop.f32.mrf.mxu1  ;;  %v1530_v27 = vpack.c.bf16 %v1476_v26, %v1474_v25  ;;  %v1333_v23 = vadd.f32 %v1332_v43, %v4089_v49  ;;  %v1524_v53 = vpack.c.bf16 %v1464_v45, %v1462_v6  ;;  %v2499_v49 = vld [vmem:[%s4051_s5 + $0x4] sm:$0xf]  ;;  %v4099_v25 = vld [vmem:[#allocation17_spill] sm:$0xff] }
 0x329   :  { %1752 = vmatmul.bf16.gmra.mxu2 %v3758_v39  ;;  %v1417_v24 = vadd.f32 %v3746_v19, %v1328_v15  ;;  %v3808_v43 = vor.u32 %v2499_v49, %v2387_v21  ;;  %v1412_v42 = vadd.f32 %v3728_v13, %v1323_v54  ;;  %v1409_v19 = vadd.f32 %v3716_v58, %v1320_v14  ;;  %v2395_v58 = vld [vmem:[%s4051_s5 + $0x18] sm:$0xf0]  ;;  %v2511_v45 = vld [vmem:[%s4051_s5 + $0x64] sm:$0xf] }
 0x32a   :  { %1763 = vmatpush.bf16.msrb.mxu3 %v1536_v48  ;;  %v1221_v48 = vadd.f32 %v3670_v5, %v1132_v31  ;;  %v1122_v5 = vadd.f32 %v4096_v38, %v3603_v17  ;;  %v1422_v35 = vadd.f32 %v1421_v2, %v1333_v23  ;;  %v1475_v2 = vmax.f32 %v3699_v40, 0.0  ;;  %v4098_v40 = vld [vmem:[#allocation18_spill] sm:$0xff]  ;;  %v2403_v31 = vld [vmem:[%s4051_s5 + $0x28] sm:$0xf0]  ;;  %v3877_v23 = vpop.permute.xlu1 %1556 }
 0x32b   :  { %v1483_v0 = vmax.f32 %v1417_v24, 0.0  ;;  %v1479_v41 = vmax.f32 %v1412_v42, 0.0  ;;  %v1477_v62 = vmax.f32 %v1409_v19, 0.0  ;;  %v3823_v13 = vor.u32 %v2501_v44, %v2395_v58 }
 0x32c   :  { %v1468_v16 = vmax.f32 %v1221_v48, 0.0  ;;  %v1211_v11 = vadd.f32 %v3612_v46, %v1122_v5  ;;  %v1458_v46 = vmax.f32 %v3606_v59, 0.0  ;;  %v1414_v59 = vadd.f32 %v3733_v57, %v1325_v63  ;;  %v2509_v5 = vld [vmem:[%s4051_s5 + $0x54] sm:$0xf] }
 0x32d   :  { %v1535_v26 = vpack.c.bf16 %v1485_v8, %v1483_v0  ;;  %v1531_v20 = vpack.c.bf16 %v1477_v62, %v1475_v2  ;;  %v3857_v3 = vor.u32 %v2507_v51, %v2419_v12  ;;  %v3893_v15 = vpop.permute.xlu2 %1576 }
 0x32e   :  { %1764 = vmatpush.bf16.msrb.mxu3 %v1534_v60  ;;  %v1526_v28 = vpack.c.bf16 %v1468_v16, %v1466_v18  ;;  %v1460_v17 = vmax.f32 %v1211_v11, 0.0  ;;  %v1487_v60 = vmax.f32 %v1422_v35, 0.0  ;;  %v1481_v52 = vmax.f32 %v1414_v59, 0.0  ;;  %v2427_v18 = vld [vmem:[%s4051_s5 + $0x58] sm:$0xf0]  ;;  %v3885_v35 = vpop.permute.xlu0 %1566 }
 0x330   :  { %v1423_v61 = vpop.f32.mrf.mxu1  ;;  %v1522_v33 = vpack.c.bf16 %v1460_v17, %v1458_v46  ;;  %v1533_v57 = vpack.c.bf16 %v1481_v52, %v1479_v41  ;;  %v2443_v46 = vld [vmem:[%s4051_s5 + $0x78] sm:$0xf0] }
 0x331   :  { %v1424_v50 = vadd.f32 %v1423_v61, %v1335_v34  ;;  %v3867_v61 = vor.u32 %v2509_v5, %v2427_v18  ;;  %v4103_v34 = vld [vmem:[#allocation20_spill] sm:$0xff] }
 0x332   :  { %1765 = vmatpush.bf16.msrb.mxu3 %v1532_v22  ;;  %v2503_v22 = vld [vmem:[%s4051_s5 + $0x24] sm:$0xf]  ;;  %v3889_v17 = vpop.permute.xlu1 %1571 }
 0x333   :  { %v1489_v30 = vmax.f32 %v1424_v50, 0.0  ;;  %v3837_v10 = vor.u32 %v2503_v22, %v2403_v31 }
 0x335   :  { %v1537_v36 = vpack.c.bf16 %v1489_v30, %v1487_v60  ;;  %v2513_v30 = vld [vmem:[%s4051_s5 + $0x74] sm:$0xf]  ;;  %v3911_v63 = vpop.permute.xlu2 %1591 }
 0x336   :  { %1766 = vmatpush.bf16.msrb.mxu3 %v1530_v27  ;;  %v4101_v27 = vld [vmem:[#allocation14_spill] sm:$0xff]  ;;  %v3895_v1 = vpop.permute.xlu0 %1581  ;;  %v3903_v49 = vor.u32 %v2513_v30, %v2443_v46 }
 0x339   :  { %1757 = vmatmul.bf16.gmra.mxu2 %v3778_v4 }
 0x33a   :  { %1767 = vmatpush.bf16.msrb.mxu3 %v1528_v32  ;;  %v4102_v32 = vld [vmem:[#allocation12_spill] sm:$0xff]  ;;  %v3905_v21 = vpop.permute.xlu1 %1586 }
 0x33d   :  { %v3917_v54 = vpop.permute.xlu2 %1606 }
 0x33e   :  { %1768 = vmatpush.bf16.msrb.mxu3 %v1526_v28  ;;  %v2435_v28 = vld [vmem:[%s4051_s5 + $0x68] sm:$0xf0]  ;;  %v3913_v24 = vpop.permute.xlu0 %1596 }
 0x33f   :  { %v3881_v6 = vor.u32 %v2511_v45, %v2435_v28 }
 0x342   :  { %1769 = vmatpush.bf16.msrb.mxu3 %v1524_v53  ;;  %v3915_v60 = vpop.permute.xlu1 %1601 }
 0x345   :  { %v3925_v42 = vpop.permute.xlu2 %1621 }
 0x346   :  { %1770 = vmatpush.bf16.msrb.mxu3 %v1522_v33  ;;  %v3919_v33 = vpop.permute.xlu0 %1611 }
 0x349   :  { %1771 = vmatmul.bf16.vlgmr.msrb.gmra.mxu3 %v3808_v43  ;;  %1820 = vmatmul.bf16.vlgmr.msra.gmra.mxu2 %v3646_v7  ;;  %v4097_v7 = vld [vmem:[#allocation19_spill] sm:$0xff] }
 0x34a   :  { %1861 = vmatpush.bf16.msra.mxu3 %v1537_v36  ;;  %v3923_v8 = vpop.permute.xlu1 %1616 }
 0x34c   :  { %v1723_v48 = vpop.f32.mrf.mxu2 }
 0x34d   :  { %v1724_v59 = vadd.f32 %v1723_v48, %v3877_v23 }
 0x34e   :  { %1862 = vmatpush.bf16.msra.mxu3 %v1535_v26 }
 0x352   :  { %1863 = vmatpush.bf16.msra.mxu3 %v1533_v57  ;;  %v3930_v41 = vpop.permute.xlu1 %1631  ;;  %v3932_v57 = vpop.permute.xlu2 %1960 }
 0x354   :  { %v1725_v9 = vpop.f32.mrf.mxu2 }
 0x355   :  { %v1726_v0 = vadd.f32 %v1725_v9, %v3883_v29 }
 0x356   :  { %1864 = vmatpush.bf16.msra.mxu3 %v1531_v20 }
 0x359   :  { %1776 = vmatmul.bf16.gmra.mxu3 %v3823_v13  ;;  %1825 = vmatmul.bf16.gmra.mxu2 %v3673_v56  ;;  %v2505_v56 = vld [vmem:[%s4051_s5 + $0x34] sm:$0xf] }
 0x35a   :  { %1865 = vmatpush.bf16.msra.mxu3 %v3691_v55  ;;  %v4100_v55 = vld [vmem:[#allocation15_spill] sm:$0xff]  ;;  %v3847_v37 = vor.u32 %v2505_v56, %v2411_v47  ;;  %v3944_v12 = vpop.permute.xlu2 %1975 }
 0x35c   :  { %v1728_v16 = vpop.f32.mrf.mxu2 }
 0x35d   :  { %v1729_v58 = vadd.f32 %v1728_v16, %v3885_v35 }
 0x35e   :  { %1866 = vmatpush.bf16.msra.mxu3 %v4097_v7 }
 0x362   :  { %1867 = vmatpush.bf16.msra.mxu3 %v4098_v40 }
 0x364   :  { %v1730_v38 = vpop.f32.mrf.mxu2 }
 0x365   :  { %v1731_v56 = vadd.f32 %v1730_v38, %v3889_v17 }
 0x366   :  { %1868 = vmatpush.bf16.msra.mxu3 %v4099_v25  ;;  %v3940_v25 = vpop.permute.xlu1 %1970 }
 0x369   :  { %1781 = vmatmul.bf16.gmra.mxu3 %v3837_v10  ;;  %1830 = vmatmul.bf16.gmra.mxu2 %v4100_v55 }
 0x36c   :  { %v1733_v11 = vpop.f32.mrf.mxu2 }
 0x36d   :  { %v1734_v16 = vadd.f32 %v1733_v11, %v3893_v15 }
 0x374   :  { %v3879_v50 = vpop.f32.mrf.mxu2 }
 0x375   :  { %v1736_v30 = vadd.f32 %v3879_v50, %v3895_v1 }
 0x379   :  { %1786 = vmatmul.bf16.gmra.mxu3 %v3847_v37  ;;  %1835 = vmatmul.bf16.gmra.mxu2 %v4101_v27 }
 0x37c   :  { %v3891_v53 = vpop.f32.mrf.mxu2 }
 0x389   :  { %1791 = vmatmul.bf16.gmra.mxu3 %v3857_v3  ;;  %1840 = vmatmul.bf16.gmra.mxu2 %v4102_v32 }
 0x399   :  { %1796 = vmatmul.bf16.gmra.mxu3 %v3867_v61  ;;  %1845 = vmatmul.bf16.gmra.mxu2 %v4103_v34 }
 0x3a9   :  { %1801 = vmatmul.bf16.gmra.mxu3 %v3881_v6  ;;  %1850 = vmatmul.bf16.gmra.mxu2 %v3758_v39  ;;  %v3907_v39 = vpop.f32.mrf.mxu2 }
 0x3b1   :  { %v1743_v44 = vpop.f32.mrf.mxu2 }
 0x3b9   :  { %1806 = vmatmul.bf16.gmra.mxu3 %v3903_v49  ;;  %1855 = vmatmul.bf16.gmra.mxu2 %v3778_v4  ;;  %v3927_v4 = vpop.permute.xlu0 %1626  ;;  %v1745_v48 = vpop.f32.mrf.mxu2 }
 0x3c1   :  { %v1748_v34 = vpop.f32.mrf.mxu2 }
 0x3c9   :  { %1869 = vmatmul.bf16.vlgmr.msra.gmra.mxu3 %v3808_v43  ;;  %v3934_v43 = vpop.permute.xlu0 %1965 }
 0x3cc   :  { %v1772_v36 = vpop.f32.mrf.mxu3 }
 0x3cd   :  { %v1773_v14 = vadd.f32 %v1772_v36, %v1724_v59 }
 0x3cf   :  { %v1910_v52 = vmax.f32 %v1773_v14, 0.0 }
 0x3d1   :  { %v2038_v2 = vmul.f32 %v3932_v57, %v1910_v52  ;;  %v3949_v28 = vpop.permute.xlu0 %1980 }
 0x3d4   :  { %v1774_v19 = vpop.f32.mrf.mxu3 }
 0x3d5   :  { %v1775_v26 = vadd.f32 %v1774_v19, %v1726_v0  ;;  %v3954_v0 = vpop.permute.xlu1 %1985  ;;  %v1739_v19 = vadd.f32 %v3891_v53, %v3905_v21 }
 0x3d7   :  { %v1912_v62 = vmax.f32 %v1775_v26, 0.0 }
 0x3d9   :  { %v2040_v20 = vmul.f32 %v3934_v43, %v1912_v62  ;;  %1874 = vmatmul.bf16.gmra.mxu3 %v3823_v13 }
 0x3db   :  { %v2070_v7 = vadd.f32 %v2040_v20, %v2038_v2  ;;  %v3960_v20 = vpop.permute.xlu2 %1990 }
 0x3dc   :  { %v1777_v40 = vpop.f32.mrf.mxu3 }
 0x3dd   :  { %v1778_v22 = vadd.f32 %v1777_v40, %v1729_v58 }
 0x3df   :  { %v1914_v31 = vmax.f32 %v1778_v22, 0.0 }
 0x3e1   :  { %v2042_v55 = vmul.f32 %v3940_v25, %v1914_v31 }
 0x3e3   :  { %v2071_v47 = vadd.f32 %v2070_v7, %v2042_v55  ;;  %v1741_v7 = vadd.f32 %v3907_v39, %v3911_v63 }
 0x3e4   :  { %v1779_v27 = vpop.f32.mrf.mxu3 }
 0x3e5   :  { %v1780_v9 = vadd.f32 %v1779_v27, %v1731_v56  ;;  %v1744_v56 = vadd.f32 %v1743_v44, %v3913_v24  ;;  %v1749_v44 = vadd.f32 %v1748_v34, %v3917_v54 }
 0x3e7   :  { %v1916_v51 = vmax.f32 %v1780_v9, 0.0 }
 0x3e9   :  { %v2044_v13 = vmul.f32 %v3944_v12, %v1916_v51  ;;  %1879 = vmatmul.bf16.gmra.mxu3 %v3837_v10  ;;  %v1750_v10 = vpop.f32.mrf.mxu2 }
 0x3eb   :  { %v2072_v32 = vadd.f32 %v2071_v47, %v2044_v13 }
 0x3ec   :  { %v1782_v5 = vpop.f32.mrf.mxu3 }
 0x3ed   :  { %v1783_v18 = vadd.f32 %v1782_v5, %v1734_v16  ;;  %v3970_v16 = vpop.permute.xlu1 %2000 }
 0x3ef   :  { %v1918_v45 = vmax.f32 %v1783_v18, 0.0 }
 0x3f1   :  { %v2046_v38 = vmul.f32 %v3949_v28, %v1918_v45  ;;  %v1753_v58 = vpop.f32.mrf.mxu2 }
 0x3f3   :  { %v2073_v46 = vadd.f32 %v2072_v32, %v2046_v38  ;;  %v1746_v32 = vadd.f32 %v1745_v48, %v3915_v60 }
 0x3f4   :  { %v1784_v59 = vpop.f32.mrf.mxu3 }
 0x3f5   :  { %v1785_v36 = vadd.f32 %v1784_v59, %v1736_v30 }
 0x3f7   :  { %v1920_v14 = vmax.f32 %v1785_v36, 0.0 }
 0x3f9   :  { %v2048_v11 = vmul.f32 %v3954_v0, %v1920_v14  ;;  %1884 = vmatmul.bf16.gmra.mxu3 %v3847_v37  ;;  %v3965_v37 = vpop.permute.xlu0 %1995  ;;  %v1755_v27 = vpop.f32.mrf.mxu2 }
 0x3fb   :  { %v2074_v52 = vadd.f32 %v2073_v46, %v2048_v11  ;;  %v3974_v46 = vpop.permute.xlu2 %2005 }
 0x3fc   :  { %v1787_v26 = vpop.f32.mrf.mxu3 }
 0x3fd   :  { %v1788_v62 = vadd.f32 %v1787_v26, %v1739_v19  ;;  %v1751_v26 = vadd.f32 %v1750_v10, %v3919_v33 }
 0x3ff   :  { %v1922_v2 = vmax.f32 %v1788_v62, 0.0 }
 0x401   :  { %v2050_v50 = vmul.f32 %v3960_v20, %v1922_v2  ;;  %v1758_v38 = vpop.f32.mrf.mxu2  ;;  %v3979_v19 = vpop.permute.xlu0 %2010 }
 0x403   :  { %v2075_v40 = vadd.f32 %v2074_v52, %v2050_v50 }
 0x404   :  { %v1789_v22 = vpop.f32.mrf.mxu3 }
 0x405   :  { %v1790_v31 = vadd.f32 %v1789_v22, %v1741_v7  ;;  %v1754_v22 = vadd.f32 %v1753_v58, %v3923_v8  ;;  %v1759_v58 = vadd.f32 %v1758_v38, %v3927_v4 }
 0x407   :  { %v1924_v55 = vmax.f32 %v1790_v31, 0.0 }
 0x409   :  { %v2052_v53 = vmul.f32 %v3965_v37, %v1924_v55  ;;  %1889 = vmatmul.bf16.gmra.mxu3 %v3857_v3  ;;  %v1760_v48 = vpop.f32.mrf.mxu2 }
 0x40b   :  { %v2076_v47 = vadd.f32 %v2075_v40, %v2052_v53  ;;  %v3983_v40 = vpop.permute.xlu1 %2015 }
 0x40c   :  { %v1792_v9 = vpop.f32.mrf.mxu3 }
 0x40d   :  { %v1793_v51 = vadd.f32 %v1792_v9, %v1744_v56  ;;  %v1756_v9 = vadd.f32 %v1755_v27, %v3925_v42 }
 0x40f   :  { %v1926_v13 = vmax.f32 %v1793_v51, 0.0 }
 0x411   :  { %v2054_v39 = vmul.f32 %v3970_v16, %v1926_v13  ;;  %v1821_v34 = vpop.f32.mrf.mxu2 }
 0x413   :  { %v2077_v5 = vadd.f32 %v2076_v47, %v2054_v39  ;;  %v3988_v47 = vpop.permute.xlu2 %2020 }
 0x414   :  { %v1794_v18 = vpop.f32.mrf.mxu3 }
 0x415   :  { %v1795_v45 = vadd.f32 %v1794_v18, %v1746_v32  ;;  %v3992_v18 = vpop.permute.xlu0 %2025 }
 0x417   :  { %v1928_v30 = vmax.f32 %v1795_v45, 0.0 }
 0x419   :  { %v2056_v3 = vmul.f32 %v3974_v46, %v1928_v30  ;;  %1894 = vmatmul.bf16.gmra.mxu3 %v3867_v61  ;;  %v1823_v13 = vpop.f32.mrf.mxu2 }
 0x41b   :  { %v2078_v59 = vadd.f32 %v2077_v5, %v2056_v3 }
 0x41c   :  { %v1797_v36 = vpop.f32.mrf.mxu3 }
 0x41d   :  { %v1798_v14 = vadd.f32 %v1797_v36, %v1749_v44  ;;  %v3997_v36 = vpop.permute.xlu1 %2030 }
 0x41f   :  { %v1930_v11 = vmax.f32 %v1798_v14, 0.0  ;;  %v1761_v14 = vadd.f32 %v1760_v48, %v3930_v41 }
 0x421   :  { %v2058_v52 = vmul.f32 %v3979_v19, %v1930_v11  ;;  %v1826_v44 = vpop.f32.mrf.mxu2 }
 0x423   :  { %v2079_v62 = vadd.f32 %v2078_v59, %v2058_v52 }
 0x424   :  { %v1799_v2 = vpop.f32.mrf.mxu3 }
 0x425   :  { %v1800_v50 = vadd.f32 %v1799_v2, %v1751_v26  ;;  %v4001_v2 = vpop.permute.xlu2 %2035 }
 0x427   :  { %v1932_v7 = vmax.f32 %v1800_v50, 0.0  ;;  %v1822_v50 = vadd.f32 %v1821_v34, %v3877_v23 }
 0x429   :  { %v2060_v61 = vmul.f32 %v3983_v40, %v1932_v7  ;;  %1899 = vmatmul.bf16.gmra.mxu3 %v3881_v6 }
 0x42b   :  { %v2080_v31 = vadd.f32 %v2079_v62, %v2060_v61 }
 0x42c   :  { %v1802_v55 = vpop.f32.mrf.mxu3 }
 0x42d   :  { %v1803_v53 = vadd.f32 %v1802_v55, %v1754_v22  ;;  %v1824_v55 = vadd.f32 %v1823_v13, %v3883_v29 }
 0x42f   :  { %v1934_v56 = vmax.f32 %v1803_v53, 0.0 }
 0x431   :  { %v2062_v10 = vmul.f32 %v3988_v47, %v1934_v56 }
 0x433   :  { %v2081_v51 = vadd.f32 %v2080_v31, %v2062_v10 }
 0x434   :  { %v1804_v39 = vpop.f32.mrf.mxu3 }
 0x435   :  { %v1805_v32 = vadd.f32 %v1804_v39, %v1756_v9  ;;  %v1827_v39 = vadd.f32 %v1826_v44, %v3885_v35 }
 0x437   :  { %v1936_v5 = vmax.f32 %v1805_v32, 0.0 }
 0x439   :  { %v2064_v6 = vmul.f32 %v3992_v18, %v1936_v5  ;;  %1904 = vmatmul.bf16.gmra.mxu3 %v3903_v49  ;;  %v1828_v49 = vpop.f32.mrf.mxu2 }
 0x43b   :  { %v2082_v45 = vadd.f32 %v2081_v51, %v2064_v6 }
 0x43c   :  { %v1807_v30 = vpop.f32.mrf.mxu3 }
 0x43d   :  { %v1808_v3 = vadd.f32 %v1807_v30, %v1759_v58 }
 0x43f   :  { %v1938_v59 = vmax.f32 %v1808_v3, 0.0 }
 0x441   :  { %v2066_v27 = vmul.f32 %v3997_v36, %v1938_v59  ;;  %v1831_v31 = vpop.f32.mrf.mxu2 }
 0x443   :  { %v2083_v11 = vadd.f32 %v2082_v45, %v2066_v27  ;;  %v1829_v45 = vadd.f32 %v1828_v49, %v3889_v17 }
 0x444   :  { %v1809_v52 = vpop.f32.mrf.mxu3 }
 0x445   :  { %v1810_v26 = vadd.f32 %v1809_v52, %v1761_v14 }
 0x447   :  { %v1940_v62 = vmax.f32 %v1810_v26, 0.0 }
 0x449   :  { %v2068_v38 = vmul.f32 %v4001_v2, %v1940_v62  ;;  %v1833_v5 = vpop.f32.mrf.mxu2 }
 0x44b   :  { %v4005_v7 = vadd.f32 %v2083_v11, %v2068_v38 }
 0x44c   :  { %v1870_v61 = vpop.f32.mrf.mxu3 }
 0x44d   :  { %v1871_v22 = vadd.f32 %v1870_v61, %v1822_v50 }
 0x44f   :  { %v1911_v48 = vmax.f32 %v1871_v22, 0.0 }
 0x451   :  { %v2039_v9 = vmul.f32 %v3932_v57, %v1911_v48  ;;  %v1836_v3 = vpop.f32.mrf.mxu2 }
 0x452   :  { %v1837_v48 = vadd.f32 %v1836_v3, %v3905_v21 }
 0x454   :  { %v1872_v53 = vpop.f32.mrf.mxu3 }
 0x455   :  { %v1873_v56 = vadd.f32 %v1872_v53, %v1824_v55 }
 0x457   :  { %v1913_v10 = vmax.f32 %v1873_v56, 0.0 }
 0x459   :  { %v2041_v51 = vmul.f32 %v3934_v43, %v1913_v10  ;;  %v1832_v43 = vadd.f32 %v1831_v31, %v3893_v15  ;;  %v1838_v11 = vpop.f32.mrf.mxu2  ;;  %v1834_v31 = vadd.f32 %v1833_v5, %v3895_v1 }
 0x45b   :  { %v2091_v32 = vadd.f32 %v2041_v51, %v2039_v9  ;;  %v1839_v9 = vadd.f32 %v1838_v11, %v3911_v63 }
 0x45c   :  { %v1875_v23 = vpop.f32.mrf.mxu3 }
 0x45d   :  { %v1876_v34 = vadd.f32 %v1875_v23, %v1827_v39 }
 0x45f   :  { %v1915_v6 = vmax.f32 %v1876_v34, 0.0 }
 0x461   :  { %v2043_v58 = vmul.f32 %v3940_v25, %v1915_v6  ;;  %v1841_v62 = vpop.f32.mrf.mxu2 }
 0x462   :  { %v1842_v39 = vadd.f32 %v1841_v62, %v3913_v24 }
 0x463   :  { %v2092_v29 = vadd.f32 %v2091_v32, %v2043_v58 }
 0x464   :  { %v1877_v13 = vpop.f32.mrf.mxu3 }
 0x465   :  { %v1878_v30 = vadd.f32 %v1877_v13, %v1829_v45 }
 0x467   :  { %v1917_v59 = vmax.f32 %v1878_v30, 0.0 }
 0x469   :  { %v2045_v57 = vmul.f32 %v3944_v12, %v1917_v59  ;;  %v1843_v49 = vpop.f32.mrf.mxu2 }
 0x46a   :  { %v1844_v34 = vadd.f32 %v1843_v49, %v3915_v60 }
 0x46b   :  { %v2093_v27 = vadd.f32 %v2092_v29, %v2045_v57 }
 0x46c   :  { %v1880_v35 = vpop.f32.mrf.mxu3 }
 0x46d   :  { %v1881_v44 = vadd.f32 %v1880_v35, %v1832_v43 }
 0x46f   :  { %v1919_v14 = vmax.f32 %v1881_v44, 0.0 }
 0x471   :  { %v2047_v52 = vmul.f32 %v3949_v28, %v1919_v14  ;;  %v1846_v61 = vpop.f32.mrf.mxu2 }
 0x472   :  { %v1847_v45 = vadd.f32 %v1846_v61, %v3917_v54 }
 0x473   :  { %v2094_v26 = vadd.f32 %v2093_v27, %v2047_v52 }
 0x474   :  { %v1882_v25 = vpop.f32.mrf.mxu3 }
 0x475   :  { %v1883_v56 = vadd.f32 %v1882_v25, %v1834_v31 }
 0x477   :  { %v1921_v32 = vmax.f32 %v1883_v56, 0.0 }
 0x479   :  { %v1848_v55 = vpop.f32.mrf.mxu2  ;;  %v2049_v1 = vmul.f32 %v3954_v0, %v1921_v32 }
 0x47a   :  { %v1849_v13 = vadd.f32 %v1848_v55, %v3919_v33 }
 0x47b   :  { %v2095_v57 = vadd.f32 %v2094_v26, %v2049_v1 }
 0x47c   :  { %v1885_v17 = vpop.f32.mrf.mxu3 }
 0x47d   :  { %v1886_v51 = vadd.f32 %v1885_v17, %v1837_v48 }
 0x47f   :  { %v1923_v6 = vmax.f32 %v1886_v51, 0.0 }
 0x481   :  { %v1851_v53 = vpop.f32.mrf.mxu2  ;;  %v2051_v63 = vmul.f32 %v3960_v20, %v1923_v6 }
 0x482   :  { %v1852_v24 = vadd.f32 %v1851_v53, %v3923_v8 }
 0x483   :  { %v2096_v0 = vadd.f32 %v2095_v57, %v2051_v63 }
 0x484   :  { %v1887_v38 = vpop.f32.mrf.mxu3 }
 0x485   :  { %v1888_v23 = vadd.f32 %v1887_v38, %v1839_v9 }
 0x487   :  { %v1925_v5 = vmax.f32 %v1888_v23, 0.0 }
 0x489   :  { %v1853_v10 = vpop.f32.mrf.mxu2  ;;  %v2053_v60 = vmul.f32 %v3965_v37, %v1925_v5 }
 0x48a   :  { %v1854_v54 = vadd.f32 %v1853_v10, %v3925_v42 }
 0x48b   :  { %v2097_v20 = vadd.f32 %v2096_v0, %v2053_v60 }
 0x48c   :  { %v1890_v50 = vpop.f32.mrf.mxu3 }
 0x48d   :  { %v1891_v58 = vadd.f32 %v1890_v50, %v1842_v39 }
 0x48f   :  { %v1927_v30 = vmax.f32 %v1891_v58, 0.0 }
 0x491   :  { %v1856_v59 = vpop.f32.mrf.mxu2  ;;  %v2055_v35 = vmul.f32 %v3970_v16, %v1927_v30 }
 0x492   :  { %v1857_v33 = vadd.f32 %v1856_v59, %v3927_v4 }
 0x493   :  { %v2098_v26 = vadd.f32 %v2097_v20, %v2055_v35 }
 0x494   :  { %v1892_v22 = vpop.f32.mrf.mxu3 }
 0x495   :  { %v1893_v21 = vadd.f32 %v1892_v22, %v1844_v34  ;;  %v2085_v22 = vrot.slane %v4005_v7, 4 }
 0x497   :  { %v1929_v43 = vmax.f32 %v1893_v21, 0.0 }
 0x499   :  { %v2057_v11 = vmul.f32 %v3974_v46, %v1929_v43  ;;  %v1858_v16 = vpop.f32.mrf.mxu2 }
 0x49a   :  { %v1859_v46 = vadd.f32 %v1858_v16, %v3930_v41 }
 0x49b   :  { %v2099_v49 = vadd.f32 %v2098_v26, %v2057_v11 }
 0x49c   :  { %v1895_v12 = vpop.f32.mrf.mxu3 }
 0x49d   :  { %v1896_v3 = vadd.f32 %v1895_v12, %v1847_v45 }
 0x49f   :  { %v1931_v44 = vmax.f32 %v1896_v3, 0.0 }
 0x4a1   :  { %v2059_v37 = vmul.f32 %v3979_v19, %v1931_v44 }
 0x4a3   :  { %v2100_v50 = vadd.f32 %v2099_v49, %v2059_v37 }
 0x4a4   :  { %v1897_v15 = vpop.f32.mrf.mxu3 }
 0x4a5   :  { %v1898_v27 = vadd.f32 %v1897_v15, %v1849_v13 }
 0x4a7   :  { %v1933_v52 = vmax.f32 %v1898_v27, 0.0 }
 0x4a9   :  { %v2061_v42 = vmul.f32 %v3983_v40, %v1933_v52  ;;  %v2086_v40 = vadd.f32 %v2085_v22, %v4005_v7  ;;  %v2113_v7 = vstv %s4054_s8 }
 0x4ab   :  { %v2101_v55 = vadd.f32 %v2100_v50, %v2061_v42 }
 0x4ac   :  { %v1900_v28 = vpop.f32.mrf.mxu3 }
 0x4ad   :  { %v1901_v14 = vadd.f32 %v1900_v28, %v1852_v24  ;;  %v2087_v28 = vrot.slane %v2086_v40, 2 }
 0x4af   :  { %v1935_v62 = vmax.f32 %v1901_v14, 0.0  ;;  %v2088_v39 = vadd.f32 %v2087_v28, %v2086_v40 }
 0x4b1   :  { %v2063_v61 = vmul.f32 %v3988_v47, %v1935_v62  ;;  %v2089_v23 = vrot.slane %v2088_v39, 1 }
 0x4b3   :  { %v2102_v19 = vadd.f32 %v2101_v55, %v2063_v61  ;;  %v2090_v58 = vadd.f32 %v2089_v23, %v2088_v39 }
 0x4b4   :  { %v1902_v29 = vpop.f32.mrf.mxu3 }
 0x4b5   :  { %v1903_v8 = vadd.f32 %v1902_v29, %v1854_v54 }
 0x4b7   :  { %v1937_v38 = vmax.f32 %v1903_v8, 0.0 }
 0x4b9   :  { %v2065_v12 = vmul.f32 %v3992_v18, %v1937_v38 }
 0x4bb   :  { %v2103_v48 = vadd.f32 %v2102_v19, %v2065_v12 }
 0x4bc   :  { %v1905_v25 = vpop.f32.mrf.mxu3 }
 0x4bd   :  { %v1906_v17 = vadd.f32 %v1905_v25, %v1857_v33 }
 0x4bf   :  { %v1939_v4 = vmax.f32 %v1906_v17, 0.0 }
 0x4c1   :  { %v2067_v15 = vmul.f32 %v3997_v36, %v1939_v4  ;;  %v2122_v36 = vlaneseq }
 0x4c3   :  { %v2104_v10 = vadd.f32 %v2103_v48, %v2067_v15  ;;  %vm2124_vm2 = vcmp.lt.s32.totalorder %v2122_v36, 256 }
 0x4c4   :  { %v1907_v53 = vpop.f32.mrf.mxu3 }
 0x4c5   :  { %v1908_v31 = vadd.f32 %v1907_v53, %v1859_v46 }
 0x4c7   :  { %v1941_v56 = vmax.f32 %v1908_v31, 0.0 }
 0x4c9   :  { %v2069_v47 = vmul.f32 %v4001_v2, %v1941_v56  ;;  %v2114_v2 = vadd.f32 %v2113_v7, %v2090_v58 }
 0x4cb   :  { %v2105_v9 = vadd.f32 %v2104_v10, %v2069_v47 }
 0x4cd   :  { %v2106_v51 = vrot.slane %v2105_v9, 4 }
 0x4cf   :  { %v2107_v41 = vadd.f32 %v2106_v51, %v2105_v9 }
 0x4d1   :  { %v2108_v32 = vrot.slane %v2107_v41, 2 }
 0x4d3   :  { %v2109_v18 = vadd.f32 %v2108_v32, %v2107_v41 }
 0x4d5   :  { %v2110_v34 = vrot.slane %v2109_v18, 1 }
 0x4d7   :  { %v2111_v6 = vadd.f32 %v2110_v34, %v2109_v18 }
 0x4d9   :  { %v2115_v45 = vadd.f32 %v2113_v7, %v2111_v6 }
 0x4db   :  { %v2118_v1 = vrot.slane %v2115_v45, 7 }
 0x4dd   :  { %v2120_v5 = vsel %vm2119_vm1, %v2114_v2, %v2118_v1 }
 0x4de   :  { %2126 = vst.msk [vmem:[#allocation3] sm:$0x3] %vm2124_vm2, %v2120_v5 }
 0x4df   :  { %2137 = dma.vmem_to_hbm [thread:$0]  %s2133_s18, 32, %s2135_s20, [#allocation4]  }
 0x4e0   :  { %2544 = dma.done.wait [#allocation4], 32  }
 0x4e1   :  { %2545 = vsyncadd [#allocation4], 4294967264 }
 0x4e2   :  { %2142 = vsyncpa [#allocation4], 1 }

</bundles_post_ra>
